<compile_context>
chip_gen: v6e
topology: v6e:2x2x1
jax: 0.10.0
libtpu: 0.0.40
codegen_flags: <defaults>
</compile_context>

<pallas_src>
import functools

import jax
import jax.numpy as jnp
from jax import lax
from jax.experimental import pallas as pl
from jax.experimental.pallas import tpu as pltpu

OUT_PAD = 128          # lane-dense padded output width (unmasked vst)
BATCH_TILE = 8         # sublane-aligned batch block per grid program
UNROLL_FULL_MAX = 16   # fully unroll the recurrence when S <= this, else fori_loop


def birnn_head_kernel(x_ref, w_ih_ref, b_ih_ref, w_hh_ref, pooled_ref,
                      w_out_ref, w_outp_ref, b_out_ref, out_ref, xproj_ref,
                      *, seq_len, hid, split_dirs):
    f32, bf16 = jnp.float32, jnp.bfloat16
    tb = x_ref.shape[1]
    h2 = 2 * hid

    # ---- hoisted input projection for BOTH directions (bias folded in), bf16 MXU ----
    x2d = x_ref[...].astype(bf16).reshape(seq_len * tb, hid)
    xp = jnp.dot(x2d, w_ih_ref[...], preferred_element_type=f32) + b_ih_ref[...]
    xproj_ref[...] = xp.reshape(seq_len, tb, h2)     # VMEM scratch, read per step

    if split_dirs:
        # v5e: two independent 128-wide chains (4x128x128 MXU) — no zero tiles.
        w_f = w_hh_ref[:hid, :hid]
        w_b = w_hh_ref[hid:, hid:]

        def step(s, carry):
            hf, hb, accf, accb = carry
            rev = seq_len - 1 - s
            xf = xproj_ref[s][:, :hid]        # fwd stream, position s
            xb = xproj_ref[rev][:, hid:]      # bwd stream, position S-1-s
            hf = jnp.tanh(xf + jnp.dot(hf.astype(bf16), w_f, preferred_element_type=f32))
            hb = jnp.tanh(xb + jnp.dot(hb.astype(bf16), w_b, preferred_element_type=f32))
            return hf, hb, accf + hf, accb + hb

        z = jnp.zeros((tb, hid), f32)
        carry = (z, z, z, z)
        if seq_len <= UNROLL_FULL_MAX:
            for s in range(seq_len):
                carry = step(s, carry)
        else:
            carry = lax.fori_loop(0, seq_len, step, carry, unroll=4)
        _, _, accf, accb = carry
        # both halves of the stacked output weight equal 0.5*W_seq -> one 128-wide dot
        seq_out = jnp.dot((accf + accb).astype(bf16), w_out_ref[:hid, :],
                          preferred_element_type=f32)
    else:
        # v6e / v7x: fused block-diagonal recurrence, one 256-wide MXU dot + tanh / step.
        w_hh = w_hh_ref[...]   # loop-invariant RHS (Mosaic hoists the weight push)

        def step(s, carry):
            h, acc = carry
            rev = seq_len - 1 - s
            xa = xproj_ref[s]
            xb = xproj_ref[rev]
            xs = jnp.concatenate([xa[:, :hid], xb[:, hid:]], axis=-1)   # [fwd_s | bwd_rev]
            h = jnp.tanh(xs + jnp.dot(h.astype(bf16), w_hh, preferred_element_type=f32))
            return h, acc + h

        z = jnp.zeros((tb, h2), f32)
        carry = (z, z)
        if seq_len <= UNROLL_FULL_MAX:
            for s in range(seq_len):
                carry = step(s, carry)
        else:
            carry = lax.fori_loop(0, seq_len, step, carry, unroll=4)
        _, acc = carry
        seq_out = jnp.dot(acc.astype(bf16), w_out_ref[...], preferred_element_type=f32)

    pool_out = jnp.dot(pooled_ref[...].astype(bf16), w_outp_ref[...],
                       preferred_element_type=f32)
    out_ref[...] = seq_out + pool_out + b_out_ref[...]


def _prefer_split_directions():
    """v5e's MXU is 4x(128x128): two independent 128-wide recurrence dots beat one
    256-wide block-diagonal dot (half of whose weight tiles multiply zeros)."""
    try:
        kind = jax.devices()[0].device_kind.lower()
    except Exception:
        return False
    return ("v5e" in kind) or ("v5 lite" in kind) or ("v5lite" in kind)


def prepare_fused_params(params, hid_dim, out_dim, out_pad=OUT_PAD):
    """One-time parameter transform (not per-call work)."""
    H = hid_dim
    f32, bf16 = jnp.float32, jnp.bfloat16
    z = jnp.zeros((H, H), f32)
    w_ih = jnp.concatenate([params["w_ih_f"], params["w_ih_b"]], axis=1)    # (H, 2H)
    b_ih = jnp.concatenate([params["b_f"], params["b_b"]], axis=1)          # (1, 2H)
    w_hh = jnp.block([[params["w_hh_f"], z], [z, params["w_hh_b"]]])        # (2H, 2H)
    w_seq = params["w_out"][:H, :]    # Linear rows acting on the masked seq sum
    w_pool = params["w_out"][H:, :]   # Linear rows acting on the graph-pooled feature
    # fold the (fwd+bwd)/2 direction mean into the stacked seq weight; pad to 128 lanes
    w_out_stack = 0.5 * jnp.concatenate([w_seq, w_seq], axis=0)             # (2H, out)
    w_out = jnp.zeros((2 * H, out_pad), f32).at[:, :out_dim].set(w_out_stack)
    w_outp = jnp.zeros((H, out_pad), f32).at[:, :out_dim].set(w_pool)
    b_out = jnp.zeros((1, out_pad), f32).at[:, :out_dim].set(params["b_out"])
    return {
        "w_ih": w_ih.astype(bf16), "b_ih": b_ih,
        "w_hh": w_hh.astype(bf16),
        "w_out": w_out.astype(bf16), "w_outp": w_outp.astype(bf16),
        "b_out": b_out,
    }


def birnn_head_pallas(rnn_input, pooled, fused, out_dim, *, tb=BATCH_TILE,
                      out_pad=OUT_PAD, split_dirs=None):
    B, S, H = rnn_input.shape
    if split_dirs is None:
        split_dirs = _prefer_split_directions()

    bp = ((B + tb - 1) // tb) * tb
    # Time-major so each recurrence step reads a whole sublane-aligned (tb, H) tile.
    # rnn_input is passed ONCE; the kernel forms both direction streams itself.
    x_tm = jnp.transpose(rnn_input, (1, 0, 2))          # (S, B, H)
    if bp != B:
        x_tm = jnp.pad(x_tm, ((0, 0), (0, bp - B), (0, 0)))
        pooled = jnp.pad(pooled, ((0, bp - B), (0, 0)))

    kernel = functools.partial(birnn_head_kernel, seq_len=S, hid=H,
                               split_dirs=split_dirs)
    out = pl.pallas_call(
        kernel,
        out_shape=jax.ShapeDtypeStruct((bp, out_pad), jnp.float32),
        grid_spec=pltpu.PrefetchScalarGridSpec(
            num_scalar_prefetch=0,
            grid=(bp // tb,),
            in_specs=[
                pl.BlockSpec((S, tb, H), lambda i: (0, i, 0)),      # rnn_input (time-major)
                pl.BlockSpec((H, 2 * H), lambda i: (0, 0)),         # w_ih  [W_f | W_b]
                pl.BlockSpec((1, 2 * H), lambda i: (0, 0)),         # b_ih  [b_f | b_b]
                pl.BlockSpec((2 * H, 2 * H), lambda i: (0, 0)),     # w_hh  block-diag
                pl.BlockSpec((tb, H), lambda i: (i, 0)),            # graph-pooled feature
                pl.BlockSpec((2 * H, out_pad), lambda i: (0, 0)),   # w_out (seq, mean folded)
                pl.BlockSpec((H, out_pad), lambda i: (0, 0)),       # w_outp (pool)
                pl.BlockSpec((1, out_pad), lambda i: (0, 0)),       # b_out
            ],
            out_specs=pl.BlockSpec((tb, out_pad), lambda i: (i, 0)),
            scratch_shapes=[pltpu.VMEM((S, tb, 2 * H), jnp.float32)],
        ),
        compiler_params=pltpu.CompilerParams(
            dimension_semantics=("parallel",)),   # v7x: shard batch blocks over 2 TCs
    )(x_tm, fused["w_ih"], fused["b_ih"], fused["w_hh"], pooled,
      fused["w_out"], fused["w_outp"], fused["b_out"])
    return out[:B, :out_dim]


def birnn_head_reference(rnn_input, pooled, params):
    """Pure-JAX f32 reference matching torch nn.RNN(bidirectional) + output head."""
    B, S, H = rnn_input.shape
    hf = jnp.zeros((B, H), jnp.float32)
    hb = jnp.zeros((B, H), jnp.float32)
    fwd = []
    bwd = [None] * S
    for t in range(S):
        hf = jnp.tanh(rnn_input[:, t] @ params["w_ih_f"] + hf @ params["w_hh_f"] + params["b_f"])
        fwd.append(hf)
    for t in range(S - 1, -1, -1):
        hb = jnp.tanh(rnn_input[:, t] @ params["w_ih_b"] + hb @ params["w_hh_b"] + params["b_b"])
        bwd[t] = hb
    rnn_out = (jnp.stack(fwd, axis=1) + jnp.stack(bwd, axis=1)) / 2.0   # (B, S, H)
    masked_sum = jnp.sum(rnn_out, axis=1)     # out_put_mask assumed all-valid
    head_in = jnp.concatenate([masked_sum, pooled], axis=1)             # (B, 2H)
    return head_in @ params["w_out"] + params["b_out"]


def make_params(key, hid_dim, out_dim):
    ks = jax.random.split(key, 8)
    s_rnn = 1.0 / float(hid_dim) ** 0.5        # nn.RNN default init range
    s_out = 1.0 / float(2 * hid_dim) ** 0.5    # nn.Linear(2H, out) default init range

    def u(k, shape, s):
        return jax.random.uniform(k, shape, jnp.float32, -s, s)

    return {
        # stored input-major (in, out): kernel / reference do x @ W
        "w_ih_f": u(ks[0], (hid_dim, hid_dim), s_rnn),
        "w_hh_f": u(ks[1], (hid_dim, hid_dim), s_rnn),
        "b_f":    u(ks[2], (1, hid_dim), s_rnn),      # b_ih + b_hh fused
        "w_ih_b": u(ks[3], (hid_dim, hid_dim), s_rnn),
        "w_hh_b": u(ks[4], (hid_dim, hid_dim), s_rnn),
        "b_b":    u(ks[5], (1, hid_dim), s_rnn),
        # output Linear over cat([seq_sum, pooled]): rows [:H] seq part, [H:] pool part
        "w_out":  u(ks[6], (2 * hid_dim, out_dim), s_out),
        "b_out":  u(ks[7], (1, out_dim), s_out),
    }


if __name__ == "__main__":
    hid_dim, out_dim = 128, 14
    batch, seq = 8, 8      # batch graphs, max_len sub-graph sequence

    key = jax.random.PRNGKey(0)
    pkey, xkey, gkey = jax.random.split(key, 3)
    params = make_params(pkey, hid_dim, out_dim)
    fused = prepare_fused_params(params, hid_dim, out_dim)

    # Stand-ins for the DGL-produced activations (see TODOs at top of file):
    #   rnn_input = per-sub-graph pooled GENConv features, pooled = AvgPooling(g, hv).
    rnn_input = 0.1 * jax.random.normal(xkey, (batch, seq, hid_dim), jnp.float32)
    pooled = 0.1 * jax.random.normal(gkey, (batch, hid_dim), jnp.float32)

    out = birnn_head_pallas(rnn_input, pooled, fused, out_dim)
    out = jax.block_until_ready(out)

    ref = birnn_head_reference(rnn_input, pooled, params)
    assert out.shape == (batch, out_dim)
    # bf16 MXU operands (with f32 accumulation and f32 tanh/state) shift numerics by
    # O(1e-3) vs the all-f32 reference, hence the slightly relaxed tolerance.
    assert jnp.allclose(out, ref, rtol=1e-2, atol=1e-2), (
        "Pallas output mismatch vs reference: "
        f"max abs err {float(jnp.max(jnp.abs(out - ref)))}")

    print("KERNEL_OK")
</pallas_src>

<mosaic_0001>
module attributes {stable_mosaic.version = 11 : i64} {
  func.func @birnn_head_kernel(%arg0: i32, %arg1: memref<8x8x128xf32, #tpu.memory_space<vmem>>, %arg2: memref<128x256xbf16, #tpu.memory_space<vmem>>, %arg3: memref<1x256xf32, #tpu.memory_space<vmem>>, %arg4: memref<256x256xbf16, #tpu.memory_space<vmem>>, %arg5: memref<8x128xf32, #tpu.memory_space<vmem>>, %arg6: memref<256x128xbf16, #tpu.memory_space<vmem>>, %arg7: memref<128x128xbf16, #tpu.memory_space<vmem>>, %arg8: memref<1x128xf32, #tpu.memory_space<vmem>>, %arg9: memref<8x128xf32, #tpu.memory_space<vmem>>, %arg10: memref<8x8x256xf32, #tpu.memory_space<vmem>>) attributes {dimension_semantics = [#tpu.dimension_semantics<parallel>], iteration_bounds = array<i64: 1>, scalar_prefetch = 0 : i64, scratch_operands = 1 : i64, tpu.core_type = #tpu.core_type<tc>, window_params = [{transform_indices = @transform_0, window_bounds = array<i64: 8, 8, 128>}, {pipeline_mode = #tpu.pipeline_mode<synchronous>, transform_indices = @transform_1, window_bounds = array<i64: 128, 256>}, {pipeline_mode = #tpu.pipeline_mode<synchronous>, transform_indices = @transform_2, window_bounds = array<i64: 1, 256>}, {pipeline_mode = #tpu.pipeline_mode<synchronous>, transform_indices = @transform_3, window_bounds = array<i64: 256, 256>}, {transform_indices = @transform_4, window_bounds = array<i64: 8, 128>}, {pipeline_mode = #tpu.pipeline_mode<synchronous>, transform_indices = @transform_5, window_bounds = array<i64: 256, 128>}, {pipeline_mode = #tpu.pipeline_mode<synchronous>, transform_indices = @transform_6, window_bounds = array<i64: 128, 128>}, {pipeline_mode = #tpu.pipeline_mode<synchronous>, transform_indices = @transform_7, window_bounds = array<i64: 1, 128>}, {transform_indices = @transform_8, window_bounds = array<i64: 8, 128>}]} {
    %c0 = arith.constant 0 : index
    %c0_0 = arith.constant 0 : index
    %c0_1 = arith.constant 0 : index
    %0 = vector.load %arg1[%c0, %c0_0, %c0_1] : memref<8x8x128xf32, #tpu.memory_space<vmem>>, vector<8x8x128xf32>
    %1 = arith.truncf %0 : vector<8x8x128xf32> to vector<8x8x128xbf16>
    %2 = vector.shape_cast %1 : vector<8x8x128xbf16> to vector<64x128xbf16>
    %c0_2 = arith.constant 0 : index
    %c0_3 = arith.constant 0 : index
    %3 = vector.load %arg2[%c0_2, %c0_3] : memref<128x256xbf16, #tpu.memory_space<vmem>>, vector<128x256xbf16>
    %cst = arith.constant dense<0.000000e+00> : vector<64x256xf32>
    %4 = tpu.matmul %2, %3, %cst {dimension_numbers = #tpu.dot_dimension_numbers<[1], [0], [0], [1], [0, 0, 1, 1], [], []>} : vector<64x128xbf16>, vector<128x256xbf16>, vector<64x256xf32> -> vector<64x256xf32>
    %c0_4 = arith.constant 0 : index
    %c0_5 = arith.constant 0 : index
    %5 = vector.load %arg3[%c0_4, %c0_5] : memref<1x256xf32, #tpu.memory_space<vmem>>, vector<1x256xf32>
    %6 = vector.broadcast %5 : vector<1x256xf32> to vector<64x256xf32>
    %7 = arith.addf %4, %6 : vector<64x256xf32>
    %8 = vector.shape_cast %7 : vector<64x256xf32> to vector<8x8x256xf32>
    %c0_6 = arith.constant 0 : index
    %c0_7 = arith.constant 0 : index
    %c0_8 = arith.constant 0 : index
    %9 = vector.load %arg10[%c0_6, %c0_7, %c0_8] : memref<8x8x256xf32, #tpu.memory_space<vmem>>, vector<8x8x256xf32>
    tpu.vector_store %arg10[%c0_6, %c0_7, %c0_8], %8 {strides = array<i32>} : memref<8x8x256xf32, #tpu.memory_space<vmem>>, vector<8x8x256xf32>,
    %c0_9 = arith.constant 0 : index
    %c0_10 = arith.constant 0 : index
    %10 = vector.load %arg4[%c0_9, %c0_10] : memref<256x256xbf16, #tpu.memory_space<vmem>>, vector<256x256xbf16>
    %cst_11 = arith.constant 0.000000e+00 : f32
    %11 = vector.broadcast %cst_11 : f32 to vector<8x256xf32>
    %c0_12 = arith.constant 0 : index
    %c0_13 = arith.constant 0 : index
    %c0_14 = arith.constant 0 : index
    %12 = vector.load %arg10[%c0_12, %c0_13, %c0_14] : memref<8x8x256xf32, #tpu.memory_space<vmem>>, vector<1x8x256xf32>
    %13 = vector.shape_cast %12 : vector<1x8x256xf32> to vector<8x256xf32>
    %c7 = arith.constant 7 : index
    %c0_15 = arith.constant 0 : index
    %c0_16 = arith.constant 0 : index
    %14 = vector.load %arg10[%c7, %c0_15, %c0_16] : memref<8x8x256xf32, #tpu.memory_space<vmem>>, vector<1x8x256xf32>
    %15 = vector.shape_cast %14 : vector<1x8x256xf32> to vector<8x256xf32>
    %16 = vector.extract_strided_slice %13 {offsets = [0, 0], sizes = [8, 128], strides = [1, 1]} : vector<8x256xf32> to vector<8x128xf32>
    %17 = vector.extract_strided_slice %15 {offsets = [0, 128], sizes = [8, 128], strides = [1, 1]} : vector<8x256xf32> to vector<8x128xf32>
    %18 = tpu.concatenate %16, %17 in 1 : vector<8x128xf32>, vector<8x128xf32> -> vector<8x256xf32>
    %19 = arith.truncf %11 : vector<8x256xf32> to vector<8x256xbf16>
    %cst_17 = arith.constant dense<0.000000e+00> : vector<8x256xf32>
    %20 = tpu.matmul %19, %10, %cst_17 {dimension_numbers = #tpu.dot_dimension_numbers<[1], [0], [0], [1], [0, 0, 1, 1], [], []>} : vector<8x256xbf16>, vector<256x256xbf16>, vector<8x256xf32> -> vector<8x256xf32>
    %21 = arith.addf %18, %20 : vector<8x256xf32>
    %22 = math.tanh %21 : vector<8x256xf32>
    %23 = arith.addf %11, %22 : vector<8x256xf32>
    %c1 = arith.constant 1 : index
    %c0_18 = arith.constant 0 : index
    %c0_19 = arith.constant 0 : index
    %24 = vector.load %arg10[%c1, %c0_18, %c0_19] : memref<8x8x256xf32, #tpu.memory_space<vmem>>, vector<1x8x256xf32>
    %25 = vector.shape_cast %24 : vector<1x8x256xf32> to vector<8x256xf32>
    %c6 = arith.constant 6 : index
    %c0_20 = arith.constant 0 : index
    %c0_21 = arith.constant 0 : index
    %26 = vector.load %arg10[%c6, %c0_20, %c0_21] : memref<8x8x256xf32, #tpu.memory_space<vmem>>, vector<1x8x256xf32>
    %27 = vector.shape_cast %26 : vector<1x8x256xf32> to vector<8x256xf32>
    %28 = vector.extract_strided_slice %25 {offsets = [0, 0], sizes = [8, 128], strides = [1, 1]} : vector<8x256xf32> to vector<8x128xf32>
    %29 = vector.extract_strided_slice %27 {offsets = [0, 128], sizes = [8, 128], strides = [1, 1]} : vector<8x256xf32> to vector<8x128xf32>
    %30 = tpu.concatenate %28, %29 in 1 : vector<8x128xf32>, vector<8x128xf32> -> vector<8x256xf32>
    %31 = arith.truncf %22 : vector<8x256xf32> to vector<8x256xbf16>
    %cst_22 = arith.constant dense<0.000000e+00> : vector<8x256xf32>
    %32 = tpu.matmul %31, %10, %cst_22 {dimension_numbers = #tpu.dot_dimension_numbers<[1], [0], [0], [1], [0, 0, 1, 1], [], []>} : vector<8x256xbf16>, vector<256x256xbf16>, vector<8x256xf32> -> vector<8x256xf32>
    %33 = arith.addf %30, %32 : vector<8x256xf32>
    %34 = math.tanh %33 : vector<8x256xf32>
    %35 = arith.addf %23, %34 : vector<8x256xf32>
    %c2 = arith.constant 2 : index
    %c0_23 = arith.constant 0 : index
    %c0_24 = arith.constant 0 : index
    %36 = vector.load %arg10[%c2, %c0_23, %c0_24] : memref<8x8x256xf32, #tpu.memory_space<vmem>>, vector<1x8x256xf32>
    %37 = vector.shape_cast %36 : vector<1x8x256xf32> to vector<8x256xf32>
    %c5 = arith.constant 5 : index
    %c0_25 = arith.constant 0 : index
    %c0_26 = arith.constant 0 : index
    %38 = vector.load %arg10[%c5, %c0_25, %c0_26] : memref<8x8x256xf32, #tpu.memory_space<vmem>>, vector<1x8x256xf32>
    %39 = vector.shape_cast %38 : vector<1x8x256xf32> to vector<8x256xf32>
    %40 = vector.extract_strided_slice %37 {offsets = [0, 0], sizes = [8, 128], strides = [1, 1]} : vector<8x256xf32> to vector<8x128xf32>
    %41 = vector.extract_strided_slice %39 {offsets = [0, 128], sizes = [8, 128], strides = [1, 1]} : vector<8x256xf32> to vector<8x128xf32>
    %42 = tpu.concatenate %40, %41 in 1 : vector<8x128xf32>, vector<8x128xf32> -> vector<8x256xf32>
    %43 = arith.truncf %34 : vector<8x256xf32> to vector<8x256xbf16>
    %cst_27 = arith.constant dense<0.000000e+00> : vector<8x256xf32>
    %44 = tpu.matmul %43, %10, %cst_27 {dimension_numbers = #tpu.dot_dimension_numbers<[1], [0], [0], [1], [0, 0, 1, 1], [], []>} : vector<8x256xbf16>, vector<256x256xbf16>, vector<8x256xf32> -> vector<8x256xf32>
    %45 = arith.addf %42, %44 : vector<8x256xf32>
    %46 = math.tanh %45 : vector<8x256xf32>
    %47 = arith.addf %35, %46 : vector<8x256xf32>
    %c3 = arith.constant 3 : index
    %c0_28 = arith.constant 0 : index
    %c0_29 = arith.constant 0 : index
    %48 = vector.load %arg10[%c3, %c0_28, %c0_29] : memref<8x8x256xf32, #tpu.memory_space<vmem>>, vector<1x8x256xf32>
    %49 = vector.shape_cast %48 : vector<1x8x256xf32> to vector<8x256xf32>
    %c4 = arith.constant 4 : index
    %c0_30 = arith.constant 0 : index
    %c0_31 = arith.constant 0 : index
    %50 = vector.load %arg10[%c4, %c0_30, %c0_31] : memref<8x8x256xf32, #tpu.memory_space<vmem>>, vector<1x8x256xf32>
    %51 = vector.shape_cast %50 : vector<1x8x256xf32> to vector<8x256xf32>
    %52 = vector.extract_strided_slice %49 {offsets = [0, 0], sizes = [8, 128], strides = [1, 1]} : vector<8x256xf32> to vector<8x128xf32>
    %53 = vector.extract_strided_slice %51 {offsets = [0, 128], sizes = [8, 128], strides = [1, 1]} : vector<8x256xf32> to vector<8x128xf32>
    %54 = tpu.concatenate %52, %53 in 1 : vector<8x128xf32>, vector<8x128xf32> -> vector<8x256xf32>
    %55 = arith.truncf %46 : vector<8x256xf32> to vector<8x256xbf16>
    %cst_32 = arith.constant dense<0.000000e+00> : vector<8x256xf32>
    %56 = tpu.matmul %55, %10, %cst_32 {dimension_numbers = #tpu.dot_dimension_numbers<[1], [0], [0], [1], [0, 0, 1, 1], [], []>} : vector<8x256xbf16>, vector<256x256xbf16>, vector<8x256xf32> -> vector<8x256xf32>
    %57 = arith.addf %54, %56 : vector<8x256xf32>
    %58 = math.tanh %57 : vector<8x256xf32>
    %59 = arith.addf %47, %58 : vector<8x256xf32>
    %c4_33 = arith.constant 4 : index
    %c0_34 = arith.constant 0 : index
    %c0_35 = arith.constant 0 : index
    %60 = vector.load %arg10[%c4_33, %c0_34, %c0_35] : memref<8x8x256xf32, #tpu.memory_space<vmem>>, vector<1x8x256xf32>
    %61 = vector.shape_cast %60 : vector<1x8x256xf32> to vector<8x256xf32>
    %c3_36 = arith.constant 3 : index
    %c0_37 = arith.constant 0 : index
    %c0_38 = arith.constant 0 : index
    %62 = vector.load %arg10[%c3_36, %c0_37, %c0_38] : memref<8x8x256xf32, #tpu.memory_space<vmem>>, vector<1x8x256xf32>
    %63 = vector.shape_cast %62 : vector<1x8x256xf32> to vector<8x256xf32>
    %64 = vector.extract_strided_slice %61 {offsets = [0, 0], sizes = [8, 128], strides = [1, 1]} : vector<8x256xf32> to vector<8x128xf32>
    %65 = vector.extract_strided_slice %63 {offsets = [0, 128], sizes = [8, 128], strides = [1, 1]} : vector<8x256xf32> to vector<8x128xf32>
    %66 = tpu.concatenate %64, %65 in 1 : vector<8x128xf32>, vector<8x128xf32> -> vector<8x256xf32>
    %67 = arith.truncf %58 : vector<8x256xf32> to vector<8x256xbf16>
    %cst_39 = arith.constant dense<0.000000e+00> : vector<8x256xf32>
    %68 = tpu.matmul %67, %10, %cst_39 {dimension_numbers = #tpu.dot_dimension_numbers<[1], [0], [0], [1], [0, 0, 1, 1], [], []>} : vector<8x256xbf16>, vector<256x256xbf16>, vector<8x256xf32> -> vector<8x256xf32>
    %69 = arith.addf %66, %68 : vector<8x256xf32>
    %70 = math.tanh %69 : vector<8x256xf32>
    %71 = arith.addf %59, %70 : vector<8x256xf32>
    %c5_40 = arith.constant 5 : index
    %c0_41 = arith.constant 0 : index
    %c0_42 = arith.constant 0 : index
    %72 = vector.load %arg10[%c5_40, %c0_41, %c0_42] : memref<8x8x256xf32, #tpu.memory_space<vmem>>, vector<1x8x256xf32>
    %73 = vector.shape_cast %72 : vector<1x8x256xf32> to vector<8x256xf32>
    %c2_43 = arith.constant 2 : index
    %c0_44 = arith.constant 0 : index
    %c0_45 = arith.constant 0 : index
    %74 = vector.load %arg10[%c2_43, %c0_44, %c0_45] : memref<8x8x256xf32, #tpu.memory_space<vmem>>, vector<1x8x256xf32>
    %75 = vector.shape_cast %74 : vector<1x8x256xf32> to vector<8x256xf32>
    %76 = vector.extract_strided_slice %73 {offsets = [0, 0], sizes = [8, 128], strides = [1, 1]} : vector<8x256xf32> to vector<8x128xf32>
    %77 = vector.extract_strided_slice %75 {offsets = [0, 128], sizes = [8, 128], strides = [1, 1]} : vector<8x256xf32> to vector<8x128xf32>
    %78 = tpu.concatenate %76, %77 in 1 : vector<8x128xf32>, vector<8x128xf32> -> vector<8x256xf32>
    %79 = arith.truncf %70 : vector<8x256xf32> to vector<8x256xbf16>
    %cst_46 = arith.constant dense<0.000000e+00> : vector<8x256xf32>
    %80 = tpu.matmul %79, %10, %cst_46 {dimension_numbers = #tpu.dot_dimension_numbers<[1], [0], [0], [1], [0, 0, 1, 1], [], []>} : vector<8x256xbf16>, vector<256x256xbf16>, vector<8x256xf32> -> vector<8x256xf32>
    %81 = arith.addf %78, %80 : vector<8x256xf32>
    %82 = math.tanh %81 : vector<8x256xf32>
    %83 = arith.addf %71, %82 : vector<8x256xf32>
    %c6_47 = arith.constant 6 : index
    %c0_48 = arith.constant 0 : index
    %c0_49 = arith.constant 0 : index
    %84 = vector.load %arg10[%c6_47, %c0_48, %c0_49] : memref<8x8x256xf32, #tpu.memory_space<vmem>>, vector<1x8x256xf32>
    %85 = vector.shape_cast %84 : vector<1x8x256xf32> to vector<8x256xf32>
    %c1_50 = arith.constant 1 : index
    %c0_51 = arith.constant 0 : index
    %c0_52 = arith.constant 0 : index
    %86 = vector.load %arg10[%c1_50, %c0_51, %c0_52] : memref<8x8x256xf32, #tpu.memory_space<vmem>>, vector<1x8x256xf32>
    %87 = vector.shape_cast %86 : vector<1x8x256xf32> to vector<8x256xf32>
    %88 = vector.extract_strided_slice %85 {offsets = [0, 0], sizes = [8, 128], strides = [1, 1]} : vector<8x256xf32> to vector<8x128xf32>
    %89 = vector.extract_strided_slice %87 {offsets = [0, 128], sizes = [8, 128], strides = [1, 1]} : vector<8x256xf32> to vector<8x128xf32>
    %90 = tpu.concatenate %88, %89 in 1 : vector<8x128xf32>, vector<8x128xf32> -> vector<8x256xf32>
    %91 = arith.truncf %82 : vector<8x256xf32> to vector<8x256xbf16>
    %cst_53 = arith.constant dense<0.000000e+00> : vector<8x256xf32>
    %92 = tpu.matmul %91, %10, %cst_53 {dimension_numbers = #tpu.dot_dimension_numbers<[1], [0], [0], [1], [0, 0, 1, 1], [], []>} : vector<8x256xbf16>, vector<256x256xbf16>, vector<8x256xf32> -> vector<8x256xf32>
    %93 = arith.addf %90, %92 : vector<8x256xf32>
    %94 = math.tanh %93 : vector<8x256xf32>
    %95 = arith.addf %83, %94 : vector<8x256xf32>
    %c7_54 = arith.constant 7 : index
    %c0_55 = arith.constant 0 : index
    %c0_56 = arith.constant 0 : index
    %96 = vector.load %arg10[%c7_54, %c0_55, %c0_56] : memref<8x8x256xf32, #tpu.memory_space<vmem>>, vector<1x8x256xf32>
    %97 = vector.shape_cast %96 : vector<1x8x256xf32> to vector<8x256xf32>
    %c0_57 = arith.constant 0 : index
    %c0_58 = arith.constant 0 : index
    %c0_59 = arith.constant 0 : index
    %98 = vector.load %arg10[%c0_57, %c0_58, %c0_59] : memref<8x8x256xf32, #tpu.memory_space<vmem>>, vector<1x8x256xf32>
    %99 = vector.shape_cast %98 : vector<1x8x256xf32> to vector<8x256xf32>
    %100 = vector.extract_strided_slice %97 {offsets = [0, 0], sizes = [8, 128], strides = [1, 1]} : vector<8x256xf32> to vector<8x128xf32>
    %101 = vector.extract_strided_slice %99 {offsets = [0, 128], sizes = [8, 128], strides = [1, 1]} : vector<8x256xf32> to vector<8x128xf32>
    %102 = tpu.concatenate %100, %101 in 1 : vector<8x128xf32>, vector<8x128xf32> -> vector<8x256xf32>
    %103 = arith.truncf %94 : vector<8x256xf32> to vector<8x256xbf16>
    %cst_60 = arith.constant dense<0.000000e+00> : vector<8x256xf32>
    %104 = tpu.matmul %103, %10, %cst_60 {dimension_numbers = #tpu.dot_dimension_numbers<[1], [0], [0], [1], [0, 0, 1, 1], [], []>} : vector<8x256xbf16>, vector<256x256xbf16>, vector<8x256xf32> -> vector<8x256xf32>
    %105 = arith.addf %102, %104 : vector<8x256xf32>
    %106 = math.tanh %105 : vector<8x256xf32>
    %107 = arith.addf %95, %106 : vector<8x256xf32>
    %108 = arith.truncf %107 : vector<8x256xf32> to vector<8x256xbf16>
    %c0_61 = arith.constant 0 : index
    %c0_62 = arith.constant 0 : index
    %109 = vector.load %arg6[%c0_61, %c0_62] : memref<256x128xbf16, #tpu.memory_space<vmem>>, vector<256x128xbf16>
    %cst_63 = arith.constant dense<0.000000e+00> : vector<8x128xf32>
    %110 = tpu.matmul %108, %109, %cst_63 {dimension_numbers = #tpu.dot_dimension_numbers<[1], [0], [0], [1], [0, 0, 1, 1], [], []>} : vector<8x256xbf16>, vector<256x128xbf16>, vector<8x128xf32> -> vector<8x128xf32>
    %c0_64 = arith.constant 0 : index
    %c0_65 = arith.constant 0 : index
    %111 = vector.load %arg5[%c0_64, %c0_65] : memref<8x128xf32, #tpu.memory_space<vmem>>, vector<8x128xf32>
    %112 = arith.truncf %111 : vector<8x128xf32> to vector<8x128xbf16>
    %c0_66 = arith.constant 0 : index
    %c0_67 = arith.constant 0 : index
    %113 = vector.load %arg7[%c0_66, %c0_67] : memref<128x128xbf16, #tpu.memory_space<vmem>>, vector<128x128xbf16>
    %cst_68 = arith.constant dense<0.000000e+00> : vector<8x128xf32>
    %114 = tpu.matmul %112, %113, %cst_68 {dimension_numbers = #tpu.dot_dimension_numbers<[1], [0], [0], [1], [0, 0, 1, 1], [], []>} : vector<8x128xbf16>, vector<128x128xbf16>, vector<8x128xf32> -> vector<8x128xf32>
    %115 = arith.addf %110, %114 : vector<8x128xf32>
    %c0_69 = arith.constant 0 : index
    %c0_70 = arith.constant 0 : index
    %116 = vector.load %arg8[%c0_69, %c0_70] : memref<1x128xf32, #tpu.memory_space<vmem>>, vector<1x128xf32>
    %117 = vector.broadcast %116 : vector<1x128xf32> to vector<8x128xf32>
    %118 = arith.addf %115, %117 : vector<8x128xf32>
    %c0_71 = arith.constant 0 : index
    %c0_72 = arith.constant 0 : index
    %119 = vector.load %arg9[%c0_71, %c0_72] : memref<8x128xf32, #tpu.memory_space<vmem>>, vector<8x128xf32>
    tpu.vector_store %arg9[%c0_71, %c0_72], %118 {strides = array<i32>} : memref<8x128xf32, #tpu.memory_space<vmem>>, vector<8x128xf32>,
    return
  }
  func.func @transform_0(%arg0: i32) -> (i32, i32, i32) {
    %c0_i32 = arith.constant 0 : i32
    %c0_i32_0 = arith.constant 0 : i32
    %c0_i32_1 = arith.constant 0 : i32
    return %c0_i32, %arg0, %c0_i32_0 : i32, i32, i32
  }
  func.func @transform_1(%arg0: i32) -> (i32, i32) {
    %c0_i32 = arith.constant 0 : i32
    %c0_i32_0 = arith.constant 0 : i32
    %c0_i32_1 = arith.constant 0 : i32
    return %c0_i32, %c0_i32_0 : i32, i32
  }
  func.func @transform_2(%arg0: i32) -> (i32, i32) {
    %c0_i32 = arith.constant 0 : i32
    %c0_i32_0 = arith.constant 0 : i32
    %c0_i32_1 = arith.constant 0 : i32
    return %c0_i32, %c0_i32_0 : i32, i32
  }
  func.func @transform_3(%arg0: i32) -> (i32, i32) {
    %c0_i32 = arith.constant 0 : i32
    %c0_i32_0 = arith.constant 0 : i32
    %c0_i32_1 = arith.constant 0 : i32
    return %c0_i32, %c0_i32_0 : i32, i32
  }
  func.func @transform_4(%arg0: i32) -> (i32, i32) {
    %c0_i32 = arith.constant 0 : i32
    %c0_i32_0 = arith.constant 0 : i32
    return %arg0, %c0_i32 : i32, i32
  }
  func.func @transform_5(%arg0: i32) -> (i32, i32) {
    %c0_i32 = arith.constant 0 : i32
    %c0_i32_0 = arith.constant 0 : i32
    %c0_i32_1 = arith.constant 0 : i32
    return %c0_i32, %c0_i32_0 : i32, i32
  }
  func.func @transform_6(%arg0: i32) -> (i32, i32) {
    %c0_i32 = arith.constant 0 : i32
    %c0_i32_0 = arith.constant 0 : i32
    %c0_i32_1 = arith.constant 0 : i32
    return %c0_i32, %c0_i32_0 : i32, i32
  }
  func.func @transform_7(%arg0: i32) -> (i32, i32) {
    %c0_i32 = arith.constant 0 : i32
    %c0_i32_0 = arith.constant 0 : i32
    %c0_i32_1 = arith.constant 0 : i32
    return %c0_i32, %c0_i32_0 : i32, i32
  }
  func.func @transform_8(%arg0: i32) -> (i32, i32) {
    %c0_i32 = arith.constant 0 : i32
    %c0_i32_0 = arith.constant 0 : i32
    return %arg0, %c0_i32 : i32, i32
  }
}

</mosaic_0001>

<bundles_post_ra>
// kernel: tpu_custom_call.1
= control target key start
LH: loop header
LB: loop body
LE: loop exit
PB: predicated region body
PF: predicated region fallthrough
CT: control target
= control target key end

     0   :  { %13 = vsyncpa [#allocation4], 0  ;;  %s2165_s0 = inlined_call_operand.hbm [shape: f32[8,8,128], index: 0, kind: input, shape index: {}]   ;;  %s2166_s1 = inlined_call_operand.hbm [shape: bf16[128,256], index: 1, kind: input, shape index: {}]   ;;  %s2167_s2 = inlined_call_operand.vmem [shape: f32[1,256], index: 2, kind: input, shape index: {}]   ;;  %s2168_s3 = inlined_call_operand.hbm [shape: bf16[256,256], index: 3, kind: input, shape index: {}]   ;;  %s2169_s4 = inlined_call_operand.hbm [shape: f32[8,128], index: 4, kind: input, shape index: {}]   ;;  %s2170_s5 = inlined_call_operand.hbm [shape: bf16[256,128], index: 5, kind: input, shape index: {}]   ;;  %s2171_s6 = inlined_call_operand.hbm [shape: bf16[128,128], index: 6, kind: input, shape index: {}]   ;;  %s2172_s7 = inlined_call_operand.vmem [shape: f32[1,128], index: 7, kind: input, shape index: {}]   ;;  %s2173_s8 = inlined_call_operand.hbm [shape: f32[8,128], index: 8, kind: output, shape index: {}]  }
   0x1   :  { %14 = vsyncpa [#allocation7], 0 }
   0x2   :  { %15 = vsyncpa [#allocation10], 0 }
   0x3   :  { %16 = vsyncpa [#allocation13], 0 }
   0x4   :  { %17 = vsyncpa [#allocation5], 0  ;;  %s1681_s27 = smov [#allocation6]   ;;  %s1682_s29 = smov [#allocation9]  }
   0x5   :  { %s35_s28 = sshll.u32 %s1681_s27, 4  ;;  %s62_s30 = sshll.u32 %s1682_s29, 4  ;;  %s36_s28 = int_to_ptr.vmem [resolvable:$true] %s35_s28  ;;  %s63_s30 = int_to_ptr.vmem [resolvable:$true] %s62_s30 }
   0x6   :  { %s1539_s9 = scalar_lea.vmem %s36_s28, 2048  ;;  %p1544_p1 = scmp.lt.s32.totalorder %s36_s28, %s36_s28 }
   0x7   :  { %p1540_p0 = scmp.ne.s32.totalorder %s36_s28, %s1539_s9  ;;  %p1545_p2 = scmp.lt.s32.totalorder %s1539_s9, %s1539_s9 }
   0x9   :  { %p1546_p3 = por %p1545_p2, %p1544_p1 }
   0xb   :  { %p1547_p4 = pnand %p1546_p3, %p1540_p0 }
   0xd   :  { %1550 = shalt.err (!%p1547_p4)
}
   0xe   :  { %s1683_s10 = smov 128   ;;  %s1684_s11 = smov 8  }
   0xf   :  { %41 = dma.hbm_to_vmem [thread:$0]  %s2166_s1, 2048, %s36_s28, [#allocation7], %s1683_s10, %s1683_s10, %s1684_s11  }
  0x10   :  { %s1559_s14 = scalar_lea.vmem %s63_s30, 128  ;;  %p1564_p6 = scmp.lt.s32.totalorder %s63_s30, %s63_s30 }
  0x11   :  { %p1560_p5 = scmp.ne.s32.totalorder %s63_s30, %s1559_s14  ;;  %p1565_p7 = scmp.lt.s32.totalorder %s1559_s14, %s1559_s14 }
  0x13   :  { %p1566_p8 = por %p1565_p7, %p1564_p6 }
  0x15   :  { %p1567_p9 = pnand %p1566_p8, %p1560_p5 }
  0x17   :  { %1570 = shalt.err (!%p1567_p9)
}
  0x18   :  { %65 = dma.hbm_to_vmem [thread:$0]  %s2169_s4, 128, %s63_s30, [#allocation10]  }
  0x19   :  { %s1685_s17 = smov [#allocation3]   ;;  %s1686_s19 = smov [#allocation8]  }
  0x1a   :  { %s23_s18 = sshll.u32 %s1685_s17, 4  ;;  %s49_s20 = sshll.u32 %s1686_s19, 4  ;;  %s24_s18 = int_to_ptr.vmem [resolvable:$true] %s23_s18  ;;  %s50_s20 = int_to_ptr.vmem [resolvable:$true] %s49_s20 }
  0x1b   :  { %s1579_s21 = scalar_lea.vmem %s24_s18, 1024  ;;  %p1584_p11 = scmp.lt.s32.totalorder %s24_s18, %s24_s18 }
  0x1c   :  { %p1580_p10 = scmp.ne.s32.totalorder %s24_s18, %s1579_s21  ;;  %p1585_p12 = scmp.lt.s32.totalorder %s1579_s21, %s1579_s21 }
  0x1e   :  { %p1586_p13 = por %p1585_p12, %p1584_p11 }
  0x20   :  { %p1587_p0 = pnand %p1586_p13, %p1580_p10 }
  0x22   :  { %1590 = shalt.err (!%p1587_p0)
}
  0x23   :  { %29 = dma.hbm_to_vmem [thread:$0]  %s2165_s0, 1024, %s24_s18, [#allocation4], %s1683_s10, %s1683_s10, %s1684_s11  }
  0x24   :  { %s1599_s4 = scalar_lea.vmem %s50_s20, 4096  ;;  %p1604_p2 = scmp.lt.s32.totalorder %s50_s20, %s50_s20 }
  0x25   :  { %p1600_p1 = scmp.ne.s32.totalorder %s50_s20, %s1599_s4  ;;  %p1605_p3 = scmp.lt.s32.totalorder %s1599_s4, %s1599_s4 }
  0x27   :  { %p1606_p4 = por %p1605_p3, %p1604_p2 }
  0x29   :  { %p1607_p5 = pnand %p1606_p4, %p1600_p1 }
  0x2b   :  { %1610 = shalt.err (!%p1607_p5)
}
  0x2c   :  { %55 = dma.hbm_to_vmem [thread:$0]  %s2168_s3, 4096, %s50_s20, [#allocation7], %s1683_s10, %s1683_s10, %s1684_s11  }
  0x2d   :  { %s1687_s25 = smov [#allocation11]  }
  0x2e   :  { %s71_s26 = sshll.u32 %s1687_s25, 4  ;;  %s72_s26 = int_to_ptr.vmem [resolvable:$true] %s71_s26 }
  0x2f   :  { %s1619_s27 = scalar_lea.vmem %s72_s26, 2048  ;;  %p1624_p7 = scmp.lt.s32.totalorder %s72_s26, %s72_s26 }
  0x30   :  { %p1620_p6 = scmp.ne.s32.totalorder %s72_s26, %s1619_s27  ;;  %p1625_p8 = scmp.lt.s32.totalorder %s1619_s27, %s1619_s27 }
  0x32   :  { %p1626_p9 = por %p1625_p8, %p1624_p7 }
  0x34   :  { %p1627_p10 = pnand %p1626_p9, %p1620_p6 }
  0x36   :  { %1630 = shalt.err (!%p1627_p10)
}
  0x37   :  { %s1688_s0 = smov 64   ;;  %s1689_s28 = smov 4  }
  0x38   :  { %77 = dma.hbm_to_vmem [thread:$0]  %s2170_s5, 2048, %s72_s26, [#allocation10], %s1688_s0, %s1688_s0, %s1689_s28  }
  0x39   :  { %s1690_s9 = smov [#allocation12]  }
  0x3a   :  { %s83_s12 = sshll.u32 %s1690_s9, 4  ;;  %s84_s12 = int_to_ptr.vmem [resolvable:$true] %s83_s12 }
  0x3b   :  { %s1639_s3 = scalar_lea.vmem %s84_s12, 1024  ;;  %p1644_p12 = scmp.lt.s32.totalorder %s84_s12, %s84_s12 }
  0x3c   :  { %p1640_p11 = scmp.ne.s32.totalorder %s84_s12, %s1639_s3  ;;  %p1645_p13 = scmp.lt.s32.totalorder %s1639_s3, %s1639_s3 }
  0x3e   :  { %p1646_p0 = por %p1645_p13, %p1644_p12 }
  0x40   :  { %p1647_p1 = pnand %p1646_p0, %p1640_p11 }
  0x42   :  { %1650 = shalt.err (!%p1647_p1)
}
  0x43   :  { %89 = dma.hbm_to_vmem [thread:$0]  %s2171_s6, 1024, %s84_s12, [#allocation13], %s1688_s0, %s1688_s0, %s1689_s28  }
  0x44   :  { %1671 = dma.done.wait [#allocation4], 1024  }
  0x45   :  { %1672 = vsyncadd [#allocation4], 4294966272 }
  0x46   :  { %1673 = dma.done.wait [#allocation7], 6144  }
  0x47   :  { %1674 = vsyncadd [#allocation7], 4294961152 }
  0x48   :  { %1675 = dma.done.wait [#allocation10], 2176  }
  0x49   :  { %1676 = vsyncadd [#allocation10], 4294965120 }
  0x4a   :  { %1677 = dma.done.wait [#allocation13], 1024  }
  0x4b   :  { %1678 = vsyncadd [#allocation13], 4294966272  ;;  %v1691_v0 = vmov 0   ;;  %v1402_v1 = vld [vmem:[#allocation6 + $0x74] ss:$8 sps:$4 sm:$0xff]   ;;  %v111_v33 = vld [vmem:[#allocation3] sm:$0xff]  ;;  %v145_v61 = vlaneseq }
  0x4c   :  { %291 = vmatprep.mubr.bf16.mxu0 %v1691_v0  ;;  %577 = vmatprep.mubr.bf16.mxu1 %v1691_v0  ;;  %v1769_v2 = vld [vmem:[#allocation8 + $0x74] ss:$8 sps:$4 sm:$0xff]   ;;  %v1406_v3 = vld [vmem:[#allocation6 + $0x70] ss:$8 sps:$4 sm:$0xff]   ;;  %v1408_v5 = vld [vmem:[#allocation6 + $0x64] ss:$8 sps:$4 sm:$0xff]  }
  0x4d   :  { %259 = vmatprep.subr.bf16.mxu0 %v1402_v1  ;;  %v1771_v4 = vld [vmem:[#allocation8 + $0x70] ss:$8 sps:$4 sm:$0xff]   ;;  %545 = vmatprep.subr.bf16.mxu1 %v1769_v2  ;;  %v1775_v6 = vld [vmem:[#allocation8 + $0x64] ss:$8 sps:$4 sm:$0xff]   ;;  %v1412_v7 = vld [vmem:[#allocation6 + $0x60] ss:$8 sps:$4 sm:$0xff]  }
  0x4e   :  { %260 = vmatpush1.bf16.msra.mxu0 %v1406_v3  ;;  %546 = vmatpush1.bf16.msra.mxu1 %v1771_v4  ;;  %v1777_v8 = vld [vmem:[#allocation8 + $0x60] ss:$8 sps:$4 sm:$0xff]   ;;  %v1414_v9 = vld [vmem:[#allocation6 + $0x54] ss:$8 sps:$4 sm:$0xff]   ;;  %v1418_v11 = vld [vmem:[#allocation6 + $0x50] ss:$8 sps:$4 sm:$0xff]  }
  0x4f   :  { %261 = vmatprep.subr.bf16.mxu0 %v1408_v5  ;;  %547 = vmatprep.subr.bf16.mxu1 %v1775_v6  ;;  %v1780_v10 = vld [vmem:[#allocation8 + $0x54] ss:$8 sps:$4 sm:$0xff]   ;;  %v1782_v12 = vld [vmem:[#allocation8 + $0x50] ss:$8 sps:$4 sm:$0xff]   ;;  %v1420_v13 = vld [vmem:[#allocation6 + $0x44] ss:$8 sps:$4 sm:$0xff]  }
  0x50   :  { %v1786_v14 = vld [vmem:[#allocation8 + $0x44] ss:$8 sps:$4 sm:$0xff]   ;;  %v1424_v15 = vld [vmem:[#allocation6 + $0x40] ss:$8 sps:$4 sm:$0xff]   ;;  %v1426_v17 = vld [vmem:[#allocation6 + $0x34] ss:$8 sps:$4 sm:$0xff]  }
  0x51   :  { %v1789_v16 = vld [vmem:[#allocation8 + $0x40] ss:$8 sps:$4 sm:$0xff]   ;;  %v1792_v18 = vld [vmem:[#allocation8 + $0x34] ss:$8 sps:$4 sm:$0xff]   ;;  %v1430_v19 = vld [vmem:[#allocation6 + $0x30] ss:$8 sps:$4 sm:$0xff]  }
  0x52   :  { %262 = vmatpush1.bf16.msra.mxu0 %v1412_v7  ;;  %548 = vmatpush1.bf16.msra.mxu1 %v1777_v8  ;;  %v1794_v20 = vld [vmem:[#allocation8 + $0x30] ss:$8 sps:$4 sm:$0xff]   ;;  %v1432_v21 = vld [vmem:[#allocation6 + $0x24] ss:$8 sps:$4 sm:$0xff]   ;;  %v1436_v23 = vld [vmem:[#allocation6 + $0x20] ss:$8 sps:$4 sm:$0xff]  }
  0x53   :  { %263 = vmatprep.subr.bf16.mxu0 %v1414_v9  ;;  %549 = vmatprep.subr.bf16.mxu1 %v1780_v10  ;;  %v1798_v22 = vld [vmem:[#allocation8 + $0x24] ss:$8 sps:$4 sm:$0xff]   ;;  %v1801_v24 = vld [vmem:[#allocation8 + $0x20] ss:$8 sps:$4 sm:$0xff]   ;;  %v1438_v25 = vld [vmem:[#allocation6 + $0x14] ss:$8 sps:$4 sm:$0xff]  }
  0x54   :  { %v1804_v26 = vld [vmem:[#allocation8 + $0x14] ss:$8 sps:$4 sm:$0xff]   ;;  %v1442_v27 = vld [vmem:[#allocation6 + $0x10] ss:$8 sps:$4 sm:$0xff]   ;;  %v1444_v29 = vld [vmem:[#allocation6 + $0x4] ss:$8 sps:$4 sm:$0xff]  }
  0x55   :  { %v1807_v28 = vld [vmem:[#allocation8 + $0x10] ss:$8 sps:$4 sm:$0xff]   ;;  %v1810_v30 = vld [vmem:[#allocation8 + $0x4] ss:$8 sps:$4 sm:$0xff]   ;;  %v1448_v31 = vld [vmem:[#allocation6] ss:$8 sps:$4 sm:$0xff]  }
  0x56   :  { %264 = vmatpush1.bf16.msra.mxu0 %v1418_v11  ;;  %550 = vmatpush1.bf16.msra.mxu1 %v1782_v12  ;;  %v1812_v32 = vld [vmem:[#allocation8] ss:$8 sps:$4 sm:$0xff]   ;;  %v1816_v35 = vld [vmem:[#allocation8 + $0xf4] ss:$8 sps:$4 sm:$0xff]   ;;  %v1819_v37 = vld [vmem:[#allocation8 + $0xf0] ss:$8 sps:$4 sm:$0xff]  }
  0x57   :  { %265 = vmatprep.subr.bf16.mxu0 %v1420_v13  ;;  %551 = vmatprep.subr.bf16.mxu1 %v1786_v14  ;;  %v112_v34 = vld [vmem:[#allocation3 + $0x8] sm:$0xff]  ;;  %v113_v40 = vld [vmem:[#allocation3 + $0x10] sm:$0xff]  ;;  %v114_v41 = vld [vmem:[#allocation3 + $0x18] sm:$0xff]  ;;  %v146_v62 = vshrl.u32 %v145_v61, 7  ;;  %vm1693_vm0 = vmmov 0   ;;  %s1694_s14 = smov [#allocation14]  }
  0x58   :  { %v1333_v36 = vpack.c.bf16 %v112_v34, %v111_v33  ;;  %v1822_v38 = vld [vmem:[#allocation8 + $0xe4] ss:$8 sps:$4 sm:$0xff]   ;;  %v1825_v39 = vld [vmem:[#allocation8 + $0xe0] ss:$8 sps:$4 sm:$0xff]   ;;  %v1827_v42 = vld [vmem:[#allocation8 + $0xd4] ss:$8 sps:$4 sm:$0xff]   ;;  %v1334_v44 = vpack.c.bf16 %v114_v41, %v113_v40 }
  0x59   :  { %v1833_v43 = vld [vmem:[#allocation8 + $0xd0] ss:$8 sps:$4 sm:$0xff]   ;;  %v1836_v45 = vld [vmem:[#allocation8 + $0xc4] ss:$8 sps:$4 sm:$0xff]   ;;  %v1841_v46 = vld [vmem:[#allocation8 + $0xc0] ss:$8 sps:$4 sm:$0xff]  }
  0x5a   :  { %266 = vmatpush1.bf16.msra.mxu0 %v1424_v15  ;;  %552 = vmatpush1.bf16.msra.mxu1 %v1789_v16  ;;  %v115_v47 = vld [vmem:[#allocation3 + $0x20] sm:$0xff]  ;;  %v116_v48 = vld [vmem:[#allocation3 + $0x28] sm:$0xff]  ;;  %v1844_v49 = vld [vmem:[#allocation8 + $0xb4] ss:$8 sps:$4 sm:$0xff]   ;;  %v151_v63 = vsub.s32 1, %v146_v62  ;;  %v147_v1 = vsub.s32 0, %v146_v62 }
  0x5b   :  { %267 = vmatprep.subr.bf16.mxu0 %v1426_v17  ;;  %553 = vmatprep.subr.bf16.mxu1 %v1792_v18  ;;  %v1850_v50 = vld [vmem:[#allocation8 + $0xb0] ss:$8 sps:$4 sm:$0xff]   ;;  %v1335_v51 = vpack.c.bf16 %v116_v48, %v115_v47  ;;  %v1853_v52 = vld [vmem:[#allocation8 + $0xa4] ss:$8 sps:$4 sm:$0xff]   ;;  %v1860_v53 = vld [vmem:[#allocation8 + $0xa0] ss:$8 sps:$4 sm:$0xff]  }
  0x5c   :  { %v117_v54 = vld [vmem:[#allocation3 + $0x30] sm:$0xff]  ;;  %v118_v55 = vld [vmem:[#allocation3 + $0x38] sm:$0xff]  ;;  %v1872_v59 = vld [vmem:[#allocation8 + $0x84] ss:$8 sps:$4 sm:$0xff]   ;;  %s1244_s15 = sshll.u32 %s1694_s14, 4  ;;  %s1245_s15 = int_to_ptr.vmem [resolvable:$true] %s1244_s15 }
  0x5d   :  { %v1864_v56 = vld [vmem:[#allocation8 + $0x94] ss:$8 sps:$4 sm:$0xff]   ;;  %v1336_v57 = vpack.c.bf16 %v118_v55, %v117_v54  ;;  %v1869_v58 = vld [vmem:[#allocation8 + $0x90] ss:$8 sps:$4 sm:$0xff]   ;;  %v1877_v60 = vld [vmem:[#allocation8 + $0x80] ss:$8 sps:$4 sm:$0xff]   ;;  %p1656_p3 = scmp.lt.s32.totalorder %s1245_s15, %s1245_s15 }
  0x5e   :  { %268 = vmatpush1.bf16.msra.mxu0 %v1430_v19  ;;  %554 = vmatpush1.bf16.msra.mxu1 %v1794_v20  ;;  %s1651_s16 = scalar_lea.vmem %s1245_s15, 128 }
  0x5f   :  { %269 = vmatprep.subr.bf16.mxu0 %v1432_v21  ;;  %555 = vmatprep.subr.bf16.mxu1 %v1798_v22  ;;  %p1652_p2 = scmp.ne.s32.totalorder %s1245_s15, %s1651_s16  ;;  %p1657_p4 = scmp.lt.s32.totalorder %s1651_s16, %s1651_s16 }
  0x61   :  { %p1658_p5 = por %p1657_p4, %p1656_p3 }
  0x62   :  { %270 = vmatpush1.bf16.msra.mxu0 %v1436_v23  ;;  %556 = vmatpush1.bf16.msra.mxu1 %v1801_v24 }
  0x63   :  { %271 = vmatprep.subr.bf16.mxu0 %v1438_v25  ;;  %557 = vmatprep.subr.bf16.mxu1 %v1804_v26  ;;  %p1659_p6 = pnand %p1658_p5, %p1652_p2 }
  0x66   :  { %272 = vmatpush1.bf16.msra.mxu0 %v1442_v27  ;;  %558 = vmatpush1.bf16.msra.mxu1 %v1807_v28 }
  0x67   :  { %273 = vmatprep.subr.bf16.mxu0 %v1444_v29  ;;  %559 = vmatprep.subr.bf16.mxu1 %v1810_v30 }
  0x6a   :  { %274 = vmatpush1.bf16.msra.mxu0 %v1448_v31  ;;  %560 = vmatpush1.bf16.msra.mxu1 %v1812_v32 }
  0x6b   :  { %561 = vmatprep.subr.bf16.mxu1 %v1816_v35  ;;  %600 = vmatprep.subr.bf16.mxu0 %v1769_v2 }
  0x6d   :  { %292 = vmatmul.mubr.bf16.vlgmr.msra.gmra.mxu0 %v1333_v36 }
  0x6e   :  { %562 = vmatpush2.bf16.msra.mxu1 %v1819_v37  ;;  %301 = vmatprep.mubr.bf16.mxu0 %v1691_v0 }
  0x6f   :  { %563 = vmatprep.subr.bf16.mxu1 %v1822_v38  ;;  %601 = vmatpush1.bf16.msra.mxu0 %v1771_v4 }
  0x70   :  { %602 = vmatprep.subr.bf16.mxu0 %v1775_v6 }
  0x72   :  { %564 = vmatpush2.bf16.msra.mxu1 %v1825_v39 }
  0x73   :  { %565 = vmatprep.subr.bf16.mxu1 %v1827_v42  ;;  %603 = vmatpush1.bf16.msra.mxu0 %v1777_v8 }
  0x74   :  { %604 = vmatprep.subr.bf16.mxu0 %v1780_v10 }
  0x75   :  { %302 = vmatmul.mubr.bf16.gmra.mxu0 %v1334_v44 }
  0x76   :  { %566 = vmatpush2.bf16.msra.mxu1 %v1833_v43  ;;  %311 = vmatprep.mubr.bf16.mxu0 %v1691_v0 }
  0x77   :  { %567 = vmatprep.subr.bf16.mxu1 %v1836_v45  ;;  %605 = vmatpush1.bf16.msra.mxu0 %v1782_v12 }
  0x78   :  { %606 = vmatprep.subr.bf16.mxu0 %v1786_v14 }
  0x7a   :  { %568 = vmatpush2.bf16.msra.mxu1 %v1841_v46 }
  0x7b   :  { %569 = vmatprep.subr.bf16.mxu1 %v1844_v49  ;;  %607 = vmatpush1.bf16.msra.mxu0 %v1789_v16 }
  0x7c   :  { %608 = vmatprep.subr.bf16.mxu0 %v1792_v18 }
  0x7d   :  { %312 = vmatmul.mubr.bf16.gmra.mxu0 %v1335_v51 }
  0x7e   :  { %570 = vmatpush2.bf16.msra.mxu1 %v1850_v50  ;;  %321 = vmatprep.mubr.bf16.mxu0 %v1691_v0 }
  0x7f   :  { %571 = vmatprep.subr.bf16.mxu1 %v1853_v52  ;;  %609 = vmatpush1.bf16.msra.mxu0 %v1794_v20 }
  0x80   :  { %610 = vmatprep.subr.bf16.mxu0 %v1798_v22 }
  0x82   :  { %572 = vmatpush2.bf16.msra.mxu1 %v1860_v53 }
  0x83   :  { %573 = vmatprep.subr.bf16.mxu1 %v1864_v56  ;;  %611 = vmatpush1.bf16.msra.mxu0 %v1801_v24 }
  0x84   :  { %612 = vmatprep.subr.bf16.mxu0 %v1804_v26 }
  0x85   :  { %322 = vmatmul.mubr.bf16.gmra.mxu0 %v1336_v57 }
  0x86   :  { %574 = vmatpush2.bf16.msra.mxu1 %v1869_v58 }
  0x87   :  { %575 = vmatprep.subr.bf16.mxu1 %v1872_v59  ;;  %613 = vmatpush1.bf16.msra.mxu0 %v1807_v28 }
  0x88   :  { %614 = vmatprep.subr.bf16.mxu0 %v1810_v30 }
  0x8a   :  { %576 = vmatpush2.bf16.msra.mxu1 %v1877_v60 }
  0x8b   :  { %615 = vmatpush1.bf16.msra.mxu0 %v1812_v32  ;;  %655 = vmatprep.subr.bf16.mxu1 %v1769_v2 }
  0x8c   :  { %616 = vmatprep.subr.bf16.mxu0 %v1816_v35 }
  0x8d   :  { %578 = vmatmul.mubr.bf16.vlgmr.msra.gmra.mxu1 %v1691_v0  ;;  %v143_v0 = vld [vmem:[%s2167_s2] sm:$0x3] }
  0x8e   :  { %656 = vmatpush1.bf16.msra.mxu1 %v1771_v4  ;;  %v152_v3 = vrot.slane %v143_v0, %v151_v63  ;;  %v148_v9 = vrot.slane %v143_v0, %v147_v1 }
  0x8f   :  { %617 = vmatpush2.bf16.msra.mxu0 %v1819_v37  ;;  %657 = vmatprep.subr.bf16.mxu1 %v1775_v6 }
  0x90   :  { %618 = vmatprep.subr.bf16.mxu0 %v1822_v38 }
  0x92   :  { %658 = vmatpush1.bf16.msra.mxu1 %v1777_v8 }
  0x93   :  { %619 = vmatpush2.bf16.msra.mxu0 %v1825_v39  ;;  %659 = vmatprep.subr.bf16.mxu1 %v1780_v10 }
  0x94   :  { %620 = vmatprep.subr.bf16.mxu0 %v1827_v42 }
  0x96   :  { %660 = vmatpush1.bf16.msra.mxu1 %v1782_v12 }
  0x97   :  { %621 = vmatpush2.bf16.msra.mxu0 %v1833_v43  ;;  %661 = vmatprep.subr.bf16.mxu1 %v1786_v14 }
  0x98   :  { %622 = vmatprep.subr.bf16.mxu0 %v1836_v45 }
  0x9a   :  { %662 = vmatpush1.bf16.msra.mxu1 %v1789_v16 }
  0x9b   :  { %623 = vmatpush2.bf16.msra.mxu0 %v1841_v46  ;;  %663 = vmatprep.subr.bf16.mxu1 %v1792_v18 }
  0x9c   :  { %624 = vmatprep.subr.bf16.mxu0 %v1844_v49 }
  0x9e   :  { %664 = vmatpush1.bf16.msra.mxu1 %v1794_v20 }
  0x9f   :  { %625 = vmatpush2.bf16.msra.mxu0 %v1850_v50  ;;  %665 = vmatprep.subr.bf16.mxu1 %v1798_v22 }
  0xa0   :  { %626 = vmatprep.subr.bf16.mxu0 %v1853_v52 }
  0xa2   :  { %666 = vmatpush1.bf16.msra.mxu1 %v1801_v24 }
  0xa3   :  { %627 = vmatpush2.bf16.msra.mxu0 %v1860_v53  ;;  %667 = vmatprep.subr.bf16.mxu1 %v1804_v26 }
  0xa4   :  { %628 = vmatprep.subr.bf16.mxu0 %v1864_v56 }
  0xa6   :  { %668 = vmatpush1.bf16.msra.mxu1 %v1807_v28 }
  0xa7   :  { %629 = vmatpush2.bf16.msra.mxu0 %v1869_v58  ;;  %669 = vmatprep.subr.bf16.mxu1 %v1810_v30 }
  0xa8   :  { %630 = vmatprep.subr.bf16.mxu0 %v1872_v59 }
  0xaa   :  { %670 = vmatpush1.bf16.msra.mxu1 %v1812_v32 }
  0xab   :  { %631 = vmatpush2.bf16.msra.mxu0 %v1877_v60  ;;  %671 = vmatprep.subr.bf16.mxu1 %v1816_v35 }
  0xac   :  { %710 = vmatprep.subr.bf16.mxu0 %v1769_v2 }
  0xae   :  { %672 = vmatpush2.bf16.msra.mxu1 %v1819_v37 }
  0xaf   :  { %673 = vmatprep.subr.bf16.mxu1 %v1822_v38 }
  0xb2   :  { %674 = vmatpush2.bf16.msra.mxu1 %v1825_v39 }
  0xb3   :  { %675 = vmatprep.subr.bf16.mxu1 %v1827_v42 }
  0xb6   :  { %676 = vmatpush2.bf16.msra.mxu1 %v1833_v43 }
  0xb7   :  { %677 = vmatprep.subr.bf16.mxu1 %v1836_v45 }
  0xba   :  { %678 = vmatpush2.bf16.msra.mxu1 %v1841_v46 }
  0xbb   :  { %679 = vmatprep.subr.bf16.mxu1 %v1844_v49 }
  0xbe   :  { %680 = vmatpush2.bf16.msra.mxu1 %v1850_v50 }
  0xbf   :  { %681 = vmatprep.subr.bf16.mxu1 %v1853_v52 }
  0xc2   :  { %682 = vmatpush2.bf16.msra.mxu1 %v1860_v53 }
  0xc3   :  { %683 = vmatprep.subr.bf16.mxu1 %v1864_v56 }
  0xc6   :  { %684 = vmatpush2.bf16.msra.mxu1 %v1869_v58 }
  0xc7   :  { %685 = vmatprep.subr.bf16.mxu1 %v1872_v59 }
  0xca   :  { %686 = vmatpush2.bf16.msra.mxu1 %v1877_v60 }
  0xcb   :  { %759 = vmatprep.subr.bf16.mxu1 %v1769_v2 }
 0x12d   :  { %v293_v5 = vpop.f32.mrf.mxu0 }
 0x12f   :  { %v295_v7 = vpop.f32.mrf.mxu0 }
 0x130   :  { %v1938_v11 = vadd.f32 %v295_v7, %v152_v3  ;;  %v294_v7 = vadd.f32 %v293_v5, %v148_v9 }
 0x131   :  { %v297_v13 = vpop.f32.mrf.mxu0 }
 0x132   :  { %v1940_v15 = vadd.f32 %v297_v13, %v148_v9 }
 0x133   :  { %v299_v17 = vpop.f32.mrf.mxu0 }
 0x134   :  { %v1942_v19 = vadd.f32 %v299_v17, %v152_v3 }
 0x135   :  { %v303_v21 = vpop.f32.mrf.mxu0 }
 0x136   :  { %v1944_v23 = vadd.f32 %v303_v21, %v148_v9 }
 0x137   :  { %v305_v25 = vpop.f32.mrf.mxu0 }
 0x138   :  { %v1946_v27 = vadd.f32 %v305_v25, %v152_v3 }
 0x139   :  { %v307_v29 = vpop.f32.mrf.mxu0 }
 0x13a   :  { %v1948_v31 = vadd.f32 %v307_v29, %v148_v9 }
 0x13b   :  { %v309_v33 = vpop.f32.mrf.mxu0 }
 0x13c   :  { %v1950_v34 = vadd.f32 %v309_v33, %v152_v3 }
 0x13d   :  { %v313_v36 = vpop.f32.mrf.mxu0 }
 0x13e   :  { %v1952_v40 = vadd.f32 %v313_v36, %v148_v9 }
 0x13f   :  { %v315_v41 = vpop.f32.mrf.mxu0 }
 0x140   :  { %v1954_v44 = vadd.f32 %v315_v41, %v152_v3 }
 0x141   :  { %v317_v47 = vpop.f32.mrf.mxu0 }
 0x142   :  { %v1956_v48 = vadd.f32 %v317_v47, %v148_v9 }
 0x143   :  { %v319_v51 = vpop.f32.mrf.mxu0 }
 0x144   :  { %v1958_v54 = vadd.f32 %v319_v51, %v152_v3 }
 0x145   :  { %v323_v55 = vpop.f32.mrf.mxu0 }
 0x146   :  { %v1960_v57 = vadd.f32 %v323_v55, %v148_v9 }
 0x147   :  { %v325_v61 = vpop.f32.mrf.mxu0 }
 0x148   :  { %v326_v62 = vadd.f32 %v325_v61, %v152_v3 }
 0x149   :  { %v327_v63 = vpop.f32.mrf.mxu0 }
 0x14a   :  { %v1962_v0 = vadd.f32 %v327_v63, %v148_v9 }
 0x14b   :  { %v329_v1 = vpop.f32.mrf.mxu0 }
 0x14c   :  { %v330_v17 = vadd.f32 %v329_v1, %v152_v3 }
 0x14d   :  { %v579_v13 = vpop.f32.mrf.mxu1 }
 0x14e   :  { %v586_v21 = vadd.f32 %v579_v13, %v294_v7 }
 0x14f   :  { %v581_v25 = vpop.f32.mrf.mxu1 }
 0x150   :  { %v587_v29 = vadd.f32 %v581_v25, %v330_v17  ;;  %1498 = vtanh.f32 %v586_v21 }
 0x151   :  { %v583_v33 = vpop.f32.mrf.mxu1 }
 0x152   :  { %1500 = vtanh.f32 %v587_v29 }
 0x153   :  { %v584_v36 = vpop.f32.mrf.mxu1 }
 0x15d   :  { %v1964_v41 = vpop.eup %1498 }
 0x15e   :  { %v598_v55 = vpack.c.bf16 %v1964_v41, %v1964_v41 }
 0x15f   :  { %v1966_v47 = vpop.eup %1500 }
 0x160   :  { %v599_v51 = vpack.c.bf16 %v1966_v47, %v1966_v47 }
 0x162   :  { %632 = vmatprep.mubr.bf16.mxu0 %v599_v51 }
 0x163   :  { %633 = vmatmul.mubr.bf16.vlgmr.msra.gmra.mxu0 %v598_v55 }
 0x164   :  { %711 = vmatpush1.bf16.msra.mxu0 %v1771_v4 }
 0x165   :  { %712 = vmatprep.subr.bf16.mxu0 %v1775_v6 }
 0x168   :  { %713 = vmatpush1.bf16.msra.mxu0 %v1777_v8 }
 0x169   :  { %714 = vmatprep.subr.bf16.mxu0 %v1780_v10 }
 0x16c   :  { %715 = vmatpush1.bf16.msra.mxu0 %v1782_v12 }
 0x16d   :  { %716 = vmatprep.subr.bf16.mxu0 %v1786_v14 }
 0x170   :  { %717 = vmatpush1.bf16.msra.mxu0 %v1789_v16 }
 0x171   :  { %718 = vmatprep.subr.bf16.mxu0 %v1792_v18 }
 0x174   :  { %719 = vmatpush1.bf16.msra.mxu0 %v1794_v20 }
 0x175   :  { %720 = vmatprep.subr.bf16.mxu0 %v1798_v22 }
 0x178   :  { %721 = vmatpush1.bf16.msra.mxu0 %v1801_v24 }
 0x179   :  { %722 = vmatprep.subr.bf16.mxu0 %v1804_v26 }
 0x17c   :  { %723 = vmatpush1.bf16.msra.mxu0 %v1807_v28 }
 0x17d   :  { %724 = vmatprep.subr.bf16.mxu0 %v1810_v30 }
 0x180   :  { %725 = vmatpush1.bf16.msra.mxu0 %v1812_v32 }
 0x181   :  { %726 = vmatprep.subr.bf16.mxu0 %v1816_v35 }
 0x184   :  { %727 = vmatpush2.bf16.msra.mxu0 %v1819_v37 }
 0x185   :  { %728 = vmatprep.subr.bf16.mxu0 %v1822_v38 }
 0x188   :  { %729 = vmatpush2.bf16.msra.mxu0 %v1825_v39 }
 0x189   :  { %730 = vmatprep.subr.bf16.mxu0 %v1827_v42 }
 0x18c   :  { %731 = vmatpush2.bf16.msra.mxu0 %v1833_v43 }
 0x18d   :  { %732 = vmatprep.subr.bf16.mxu0 %v1836_v45 }
 0x190   :  { %733 = vmatpush2.bf16.msra.mxu0 %v1841_v46 }
 0x191   :  { %734 = vmatprep.subr.bf16.mxu0 %v1844_v49 }
 0x194   :  { %735 = vmatpush2.bf16.msra.mxu0 %v1850_v50 }
 0x195   :  { %736 = vmatprep.subr.bf16.mxu0 %v1853_v52 }
 0x198   :  { %737 = vmatpush2.bf16.msra.mxu0 %v1860_v53 }
 0x199   :  { %738 = vmatprep.subr.bf16.mxu0 %v1864_v56 }
 0x19c   :  { %739 = vmatpush2.bf16.msra.mxu0 %v1869_v58 }
 0x19d   :  { %740 = vmatprep.subr.bf16.mxu0 %v1872_v59 }
 0x1a0   :  { %741 = vmatpush2.bf16.msra.mxu0 %v1877_v60 }
 0x1a1   :  { %808 = vmatprep.subr.bf16.mxu0 %v1769_v2 }
 0x223   :  { %v634_v3 = vpop.f32.mrf.mxu0 }
 0x224   :  { %v641_v5 = vadd.f32 %v634_v3, %v1940_v15 }
 0x225   :  { %v636_v9 = vpop.f32.mrf.mxu0 }
 0x226   :  { %v642_v61 = vadd.f32 %v636_v9, %v326_v62  ;;  %1502 = vtanh.f32 %v641_v5 }
 0x227   :  { %v638_v63 = vpop.f32.mrf.mxu0 }
 0x228   :  { %1504 = vtanh.f32 %v642_v61 }
 0x229   :  { %v639_v1 = vpop.f32.mrf.mxu0 }
 0x233   :  { %v1503_v7 = vpop.eup %1502 }
 0x234   :  { %v653_v21 = vpack.c.bf16 %v1503_v7, %v1503_v7  ;;  %v645_v51 = vadd.f32 %v1503_v7, %v1964_v41 }
 0x235   :  { %v1505_v13 = vpop.eup %1504 }
 0x236   :  { %v654_v17 = vpack.c.bf16 %v1505_v13, %v1505_v13  ;;  %v646_v3 = vadd.f32 %v1505_v13, %v1966_v47 }
 0x238   :  { %687 = vmatprep.mubr.bf16.mxu1 %v654_v17 }
 0x239   :  { %688 = vmatmul.mubr.bf16.vlgmr.msra.gmra.mxu1 %v653_v21 }
 0x23a   :  { %760 = vmatpush1.bf16.msra.mxu1 %v1771_v4 }
 0x23b   :  { %761 = vmatprep.subr.bf16.mxu1 %v1775_v6 }
 0x23e   :  { %762 = vmatpush1.bf16.msra.mxu1 %v1777_v8 }
 0x23f   :  { %763 = vmatprep.subr.bf16.mxu1 %v1780_v10 }
 0x242   :  { %764 = vmatpush1.bf16.msra.mxu1 %v1782_v12 }
 0x243   :  { %765 = vmatprep.subr.bf16.mxu1 %v1786_v14 }
 0x246   :  { %766 = vmatpush1.bf16.msra.mxu1 %v1789_v16 }
 0x247   :  { %767 = vmatprep.subr.bf16.mxu1 %v1792_v18 }
 0x24a   :  { %768 = vmatpush1.bf16.msra.mxu1 %v1794_v20 }
 0x24b   :  { %769 = vmatprep.subr.bf16.mxu1 %v1798_v22 }
 0x24e   :  { %770 = vmatpush1.bf16.msra.mxu1 %v1801_v24 }
 0x24f   :  { %771 = vmatprep.subr.bf16.mxu1 %v1804_v26 }
 0x252   :  { %772 = vmatpush1.bf16.msra.mxu1 %v1807_v28 }
 0x253   :  { %773 = vmatprep.subr.bf16.mxu1 %v1810_v30 }
 0x256   :  { %774 = vmatpush1.bf16.msra.mxu1 %v1812_v32 }
 0x257   :  { %775 = vmatprep.subr.bf16.mxu1 %v1816_v35 }
 0x25a   :  { %776 = vmatpush2.bf16.msra.mxu1 %v1819_v37 }
 0x25b   :  { %777 = vmatprep.subr.bf16.mxu1 %v1822_v38 }
 0x25e   :  { %778 = vmatpush2.bf16.msra.mxu1 %v1825_v39 }
 0x25f   :  { %779 = vmatprep.subr.bf16.mxu1 %v1827_v42 }
 0x262   :  { %780 = vmatpush2.bf16.msra.mxu1 %v1833_v43 }
 0x263   :  { %781 = vmatprep.subr.bf16.mxu1 %v1836_v45 }
 0x266   :  { %782 = vmatpush2.bf16.msra.mxu1 %v1841_v46 }
 0x267   :  { %783 = vmatprep.subr.bf16.mxu1 %v1844_v49 }
 0x26a   :  { %784 = vmatpush2.bf16.msra.mxu1 %v1850_v50 }
 0x26b   :  { %785 = vmatprep.subr.bf16.mxu1 %v1853_v52 }
 0x26e   :  { %786 = vmatpush2.bf16.msra.mxu1 %v1860_v53 }
 0x26f   :  { %787 = vmatprep.subr.bf16.mxu1 %v1864_v56 }
 0x272   :  { %788 = vmatpush2.bf16.msra.mxu1 %v1869_v58 }
 0x273   :  { %789 = vmatprep.subr.bf16.mxu1 %v1872_v59 }
 0x276   :  { %790 = vmatpush2.bf16.msra.mxu1 %v1877_v60 }
 0x277   :  { %857 = vmatprep.subr.bf16.mxu1 %v1769_v2 }
 0x2f9   :  { %v689_v15 = vpop.f32.mrf.mxu1 }
 0x2fa   :  { %v696_v62 = vadd.f32 %v689_v15, %v1944_v23 }
 0x2fb   :  { %v691_v25 = vpop.f32.mrf.mxu1 }
 0x2fc   :  { %1506 = vtanh.f32 %v696_v62  ;;  %v697_v29 = vadd.f32 %v691_v25, %v1958_v54 }
 0x2fd   :  { %v693_v33 = vpop.f32.mrf.mxu1 }
 0x2fe   :  { %1508 = vtanh.f32 %v697_v29 }
 0x2ff   :  { %v694_v36 = vpop.f32.mrf.mxu1 }
 0x309   :  { %v1507_v55 = vpop.eup %1506 }
 0x30a   :  { %v700_v5 = vadd.f32 %v1507_v55, %v645_v51  ;;  %v708_v1 = vpack.c.bf16 %v1507_v55, %v1507_v55 }
 0x30b   :  { %v1509_v9 = vpop.eup %1508 }
 0x30c   :  { %v709_v61 = vpack.c.bf16 %v1509_v9, %v1509_v9  ;;  %v701_v63 = vadd.f32 %v1509_v9, %v646_v3 }
 0x30e   :  { %742 = vmatprep.mubr.bf16.mxu0 %v709_v61 }
 0x30f   :  { %743 = vmatmul.mubr.bf16.vlgmr.msra.gmra.mxu0 %v708_v1  ;;  %v1485_v1 = vld [vmem:[#allocation11 + $0x20] sm:$0xff]  }
 0x310   :  { %809 = vmatpush1.bf16.msra.mxu0 %v1771_v4 }
 0x311   :  { %810 = vmatprep.subr.bf16.mxu0 %v1775_v6 }
 0x314   :  { %811 = vmatpush1.bf16.msra.mxu0 %v1777_v8 }
 0x315   :  { %812 = vmatprep.subr.bf16.mxu0 %v1780_v10 }
 0x318   :  { %813 = vmatpush1.bf16.msra.mxu0 %v1782_v12 }
 0x319   :  { %814 = vmatprep.subr.bf16.mxu0 %v1786_v14 }
 0x31c   :  { %815 = vmatpush1.bf16.msra.mxu0 %v1789_v16 }
 0x31d   :  { %816 = vmatprep.subr.bf16.mxu0 %v1792_v18 }
 0x320   :  { %817 = vmatpush1.bf16.msra.mxu0 %v1794_v20 }
 0x321   :  { %818 = vmatprep.subr.bf16.mxu0 %v1798_v22 }
 0x324   :  { %819 = vmatpush1.bf16.msra.mxu0 %v1801_v24 }
 0x325   :  { %820 = vmatprep.subr.bf16.mxu0 %v1804_v26 }
 0x328   :  { %821 = vmatpush1.bf16.msra.mxu0 %v1807_v28 }
 0x329   :  { %822 = vmatprep.subr.bf16.mxu0 %v1810_v30 }
 0x32c   :  { %823 = vmatpush1.bf16.msra.mxu0 %v1812_v32 }
 0x32d   :  { %824 = vmatprep.subr.bf16.mxu0 %v1816_v35 }
 0x330   :  { %825 = vmatpush2.bf16.msra.mxu0 %v1819_v37 }
 0x331   :  { %826 = vmatprep.subr.bf16.mxu0 %v1822_v38 }
 0x334   :  { %827 = vmatpush2.bf16.msra.mxu0 %v1825_v39 }
 0x335   :  { %828 = vmatprep.subr.bf16.mxu0 %v1827_v42 }
 0x338   :  { %829 = vmatpush2.bf16.msra.mxu0 %v1833_v43 }
 0x339   :  { %830 = vmatprep.subr.bf16.mxu0 %v1836_v45 }
 0x33c   :  { %831 = vmatpush2.bf16.msra.mxu0 %v1841_v46 }
 0x33d   :  { %832 = vmatprep.subr.bf16.mxu0 %v1844_v49 }
 0x340   :  { %833 = vmatpush2.bf16.msra.mxu0 %v1850_v50 }
 0x341   :  { %834 = vmatprep.subr.bf16.mxu0 %v1853_v52 }
 0x344   :  { %835 = vmatpush2.bf16.msra.mxu0 %v1860_v53 }
 0x345   :  { %836 = vmatprep.subr.bf16.mxu0 %v1864_v56 }
 0x348   :  { %837 = vmatpush2.bf16.msra.mxu0 %v1869_v58 }
 0x349   :  { %838 = vmatprep.subr.bf16.mxu0 %v1872_v59 }
 0x34c   :  { %839 = vmatpush2.bf16.msra.mxu0 %v1877_v60 }
 0x34d   :  { %906 = vmatprep.subr.bf16.mxu0 %v1769_v2 }
 0x3cf   :  { %v744_v23 = vpop.f32.mrf.mxu0 }
 0x3d0   :  { %v751_v54 = vadd.f32 %v744_v23, %v1948_v31  ;;  %v1486_v23 = vld [vmem:[#allocation12 + $0x18] sm:$0xff]  }
 0x3d1   :  { %v746_v41 = vpop.f32.mrf.mxu0 }
 0x3d2   :  { %1510 = vtanh.f32 %v751_v54  ;;  %v752_v47 = vadd.f32 %v746_v41, %v1954_v44  ;;  %v1487_v54 = vld [vmem:[#allocation11 + $0x58] sm:$0xff]  }
 0x3d3   :  { %v748_v7 = vpop.f32.mrf.mxu0  ;;  %v1488_v41 = vld [vmem:[#allocation11 + $0x18] sm:$0xff]  }
 0x3d4   :  { %1512 = vtanh.f32 %v752_v47  ;;  %v1489_v47 = vld [vmem:[#allocation12 + $0x10] sm:$0xff]  }
 0x3d5   :  { %v749_v13 = vpop.f32.mrf.mxu0  ;;  %v1490_v7 = vld [vmem:[#allocation11 + $0x50] sm:$0xff]  }
 0x3d6   :  { %v1491_v13 = vld [vmem:[#allocation11 + $0x10] sm:$0xff]  }
 0x3df   :  { %v1511_v17 = vpop.eup %1510 }
 0x3e0   :  { %v755_v21 = vadd.f32 %v1511_v17, %v700_v5  ;;  %v757_v29 = vpack.c.bf16 %v1511_v17, %v1511_v17  ;;  %v1493_v17 = vld [vmem:[#allocation11 + $0x48] sm:$0xff]  }
 0x3e1   :  { %v1513_v15 = vpop.eup %1512 }
 0x3e2   :  { %v758_v62 = vpack.c.bf16 %v1513_v15, %v1513_v15  ;;  %v756_v25 = vadd.f32 %v1513_v15, %v701_v63  ;;  %v1530_v63 = vld [vmem:[#allocation8 + $0x70] ss:$8 sps:$4 sm:$0xff]  }
 0x3e3   :  { %v1494_v15 = vld [vmem:[#allocation11 + $0x8] sm:$0xff]  }
 0x3e4   :  { %791 = vmatprep.mubr.bf16.mxu1 %v758_v62  ;;  %v1496_v62 = vld [vmem:[#allocation11 + $0x40] sm:$0xff]  }
 0x3e5   :  { %792 = vmatmul.mubr.bf16.vlgmr.msra.gmra.mxu1 %v757_v29  ;;  %v987_v29 = vld [vmem:[#allocation9] sm:$0xff] }
 0x3e6   :  { %858 = vmatpush1.bf16.msra.mxu1 %v1771_v4 }
 0x3e7   :  { %859 = vmatprep.subr.bf16.mxu1 %v1775_v6 }
 0x3ea   :  { %860 = vmatpush1.bf16.msra.mxu1 %v1777_v8 }
 0x3eb   :  { %861 = vmatprep.subr.bf16.mxu1 %v1780_v10 }
 0x3ee   :  { %862 = vmatpush1.bf16.msra.mxu1 %v1782_v12 }
 0x3ef   :  { %863 = vmatprep.subr.bf16.mxu1 %v1786_v14 }
 0x3f2   :  { %864 = vmatpush1.bf16.msra.mxu1 %v1789_v16 }
 0x3f3   :  { %865 = vmatprep.subr.bf16.mxu1 %v1792_v18 }
 0x3f6   :  { %866 = vmatpush1.bf16.msra.mxu1 %v1794_v20 }
 0x3f7   :  { %867 = vmatprep.subr.bf16.mxu1 %v1798_v22 }
 0x3fa   :  { %868 = vmatpush1.bf16.msra.mxu1 %v1801_v24 }
 0x3fb   :  { %869 = vmatprep.subr.bf16.mxu1 %v1804_v26 }
 0x3fe   :  { %870 = vmatpush1.bf16.msra.mxu1 %v1807_v28 }
 0x3ff   :  { %871 = vmatprep.subr.bf16.mxu1 %v1810_v30 }
 0x402   :  { %872 = vmatpush1.bf16.msra.mxu1 %v1812_v32 }
 0x403   :  { %873 = vmatprep.subr.bf16.mxu1 %v1816_v35 }
 0x406   :  { %874 = vmatpush2.bf16.msra.mxu1 %v1819_v37 }
 0x407   :  { %875 = vmatprep.subr.bf16.mxu1 %v1822_v38 }
 0x40a   :  { %876 = vmatpush2.bf16.msra.mxu1 %v1825_v39 }
 0x40b   :  { %877 = vmatprep.subr.bf16.mxu1 %v1827_v42 }
 0x40e   :  { %878 = vmatpush2.bf16.msra.mxu1 %v1833_v43 }
 0x40f   :  { %879 = vmatprep.subr.bf16.mxu1 %v1836_v45 }
 0x412   :  { %880 = vmatpush2.bf16.msra.mxu1 %v1841_v46 }
 0x413   :  { %881 = vmatprep.subr.bf16.mxu1 %v1844_v49 }
 0x416   :  { %882 = vmatpush2.bf16.msra.mxu1 %v1850_v50 }
 0x417   :  { %883 = vmatprep.subr.bf16.mxu1 %v1853_v52 }
 0x41a   :  { %884 = vmatpush2.bf16.msra.mxu1 %v1860_v53 }
 0x41b   :  { %885 = vmatprep.subr.bf16.mxu1 %v1864_v56 }
 0x41e   :  { %886 = vmatpush2.bf16.msra.mxu1 %v1869_v58 }
 0x41f   :  { %887 = vmatprep.subr.bf16.mxu1 %v1872_v59 }
 0x422   :  { %888 = vmatpush2.bf16.msra.mxu1 %v1877_v60 }
 0x4a5   :  { %v793_v2 = vpop.f32.mrf.mxu1 }
 0x4a6   :  { %v800_v4 = vadd.f32 %v793_v2, %v1952_v40  ;;  %v1482_v40 = vld [vmem:[#allocation11 + $0x28] sm:$0xff]   ;;  %v1497_v2 = vld [vmem:[#allocation11] sm:$0xff]  }
 0x4a7   :  { %v795_v31 = vpop.f32.mrf.mxu1 }
 0x4a8   :  { %1514 = vtanh.f32 %v800_v4  ;;  %v801_v44 = vadd.f32 %v795_v31, %v1950_v34  ;;  %v1479_v34 = vld [vmem:[#allocation11 + $0x30] sm:$0xff]   ;;  %v988_v4 = vpack.c.bf16 %v987_v29, %v987_v29 }
 0x4a9   :  { %v797_v33 = vpop.f32.mrf.mxu1 }
 0x4aa   :  { %1516 = vtanh.f32 %v801_v44 }
 0x4ab   :  { %v798_v36 = vpop.f32.mrf.mxu1 }
 0x4b5   :  { %v1515_v51 = vpop.eup %1514 }
 0x4b6   :  { %v804_v55 = vadd.f32 %v1515_v51, %v755_v21  ;;  %v806_v61 = vpack.c.bf16 %v1515_v51, %v1515_v51  ;;  %v1492_v21 = vld [vmem:[#allocation12 + $0x8] sm:$0xff]  }
 0x4b7   :  { %v1517_v3 = vpop.eup %1516 }
 0x4b8   :  { %v807_v5 = vpack.c.bf16 %v1517_v3, %v1517_v3  ;;  %v805_v9 = vadd.f32 %v1517_v3, %v756_v25  ;;  %v1495_v25 = vld [vmem:[#allocation12] sm:$0xff]  }
 0x4ba   :  { %840 = vmatprep.mubr.bf16.mxu0 %v807_v5 }
 0x4bb   :  { %841 = vmatmul.mubr.bf16.vlgmr.msra.gmra.mxu0 %v806_v61 }
 0x4bc   :  { %907 = vmatpush1.bf16.msra.mxu0 %v1530_v63 }
 0x4bd   :  { %908 = vmatprep.subr.bf16.mxu0 %v1775_v6 }
 0x4c0   :  { %909 = vmatpush1.bf16.msra.mxu0 %v1777_v8 }
 0x4c1   :  { %910 = vmatprep.subr.bf16.mxu0 %v1780_v10 }
 0x4c4   :  { %911 = vmatpush1.bf16.msra.mxu0 %v1782_v12 }
 0x4c5   :  { %912 = vmatprep.subr.bf16.mxu0 %v1786_v14 }
 0x4c8   :  { %913 = vmatpush1.bf16.msra.mxu0 %v1789_v16 }
 0x4c9   :  { %914 = vmatprep.subr.bf16.mxu0 %v1792_v18 }
 0x4cc   :  { %915 = vmatpush1.bf16.msra.mxu0 %v1794_v20 }
 0x4cd   :  { %916 = vmatprep.subr.bf16.mxu0 %v1798_v22 }
 0x4d0   :  { %917 = vmatpush1.bf16.msra.mxu0 %v1801_v24 }
 0x4d1   :  { %918 = vmatprep.subr.bf16.mxu0 %v1804_v26 }
 0x4d4   :  { %919 = vmatpush1.bf16.msra.mxu0 %v1807_v28 }
 0x4d5   :  { %920 = vmatprep.subr.bf16.mxu0 %v1810_v30  ;;  %v1474_v30 = vld [vmem:[#allocation12 + $0x38] sm:$0xff]  }
 0x4d8   :  { %921 = vmatpush1.bf16.msra.mxu0 %v1812_v32  ;;  %v1475_v32 = vld [vmem:[#allocation11 + $0x78] sm:$0xff]  }
 0x4d9   :  { %922 = vmatprep.subr.bf16.mxu0 %v1816_v35  ;;  %v1692_v35 = vmov 0.0  }
 0x4da   :  { %1368 = vmatprep.subr.bf16.mxu1 %v1692_v35 }
 0x4dc   :  { %923 = vmatpush2.bf16.msra.mxu0 %v1819_v37  ;;  %v1477_v37 = vld [vmem:[#allocation12 + $0x30] sm:$0xff]  }
 0x4dd   :  { %924 = vmatprep.subr.bf16.mxu0 %v1822_v38  ;;  %v1480_v38 = vld [vmem:[#allocation12 + $0x28] sm:$0xff]  }
 0x4e0   :  { %925 = vmatpush2.bf16.msra.mxu0 %v1825_v39 }
 0x4e1   :  { %926 = vmatprep.subr.bf16.mxu0 %v1827_v42 }
 0x4e4   :  { %927 = vmatpush2.bf16.msra.mxu0 %v1833_v43 }
 0x4e5   :  { %928 = vmatprep.subr.bf16.mxu0 %v1836_v45 }
 0x4e8   :  { %929 = vmatpush2.bf16.msra.mxu0 %v1841_v46 }
 0x4e9   :  { %930 = vmatprep.subr.bf16.mxu0 %v1844_v49 }
 0x4ec   :  { %931 = vmatpush2.bf16.msra.mxu0 %v1850_v50 }
 0x4ed   :  { %932 = vmatprep.subr.bf16.mxu0 %v1853_v52 }
 0x4f0   :  { %933 = vmatpush2.bf16.msra.mxu0 %v1860_v53 }
 0x4f1   :  { %934 = vmatprep.subr.bf16.mxu0 %v1864_v56 }
 0x4f4   :  { %935 = vmatpush2.bf16.msra.mxu0 %v1869_v58  ;;  %v1476_v58 = vld [vmem:[#allocation11 + $0x38] sm:$0xff]  }
 0x4f5   :  { %936 = vmatprep.subr.bf16.mxu0 %v1872_v59 }
 0x4f8   :  { %937 = vmatpush2.bf16.msra.mxu0 %v1877_v60 }
 0x4f9   :  { %1346 = vmatprep.subr.bf16.mxu0 %v1475_v32 }
 0x57b   :  { %v842_v6 = vpop.f32.mrf.mxu0 }
 0x57c   :  { %v849_v8 = vadd.f32 %v842_v6, %v1956_v48  ;;  %v1483_v48 = vld [vmem:[#allocation12 + $0x20] sm:$0xff]  }
 0x57d   :  { %v844_v10 = vpop.f32.mrf.mxu0 }
 0x57e   :  { %1518 = vtanh.f32 %v849_v8  ;;  %v850_v12 = vadd.f32 %v844_v10, %v1946_v27  ;;  %v1478_v27 = vld [vmem:[#allocation11 + $0x70] sm:$0xff]  }
 0x57f   :  { %v846_v14 = vpop.f32.mrf.mxu0 }
 0x580   :  { %1520 = vtanh.f32 %v850_v12 }
 0x581   :  { %v847_v16 = vpop.f32.mrf.mxu0 }
 0x58b   :  { %v1519_v18 = vpop.eup %1518 }
 0x58c   :  { %v853_v20 = vadd.f32 %v1519_v18, %v804_v55  ;;  %v855_v28 = vpack.c.bf16 %v1519_v18, %v1519_v18 }
 0x58d   :  { %v1521_v22 = vpop.eup %1520 }
 0x58e   :  { %v856_v24 = vpack.c.bf16 %v1521_v22, %v1521_v22  ;;  %v854_v26 = vadd.f32 %v1521_v22, %v805_v9 }
 0x590   :  { %889 = vmatprep.mubr.bf16.mxu1 %v856_v24 }
 0x591   :  { %890 = vmatmul.mubr.bf16.vlgmr.msra.gmra.mxu1 %v855_v28 }
 0x592   :  { %1369 = vmatpush3.bf16.msra.mxu1 %v1474_v30  ;;  %1384 = vmatprep.mubr.msk.bf16.mxu1 %vm1693_vm0, %v1692_v35 }
 0x593   :  { %1370 = vmatprep.subr.bf16.mxu1 %v1692_v35 }
 0x596   :  { %1371 = vmatpush3.bf16.msra.mxu1 %v1477_v37 }
 0x597   :  { %1372 = vmatprep.subr.bf16.mxu1 %v1692_v35 }
 0x59a   :  { %1373 = vmatpush3.bf16.msra.mxu1 %v1480_v38 }
 0x59b   :  { %1374 = vmatprep.subr.bf16.mxu1 %v1692_v35 }
 0x59e   :  { %1375 = vmatpush3.bf16.msra.mxu1 %v1483_v48 }
 0x59f   :  { %1376 = vmatprep.subr.bf16.mxu1 %v1692_v35 }
 0x5a2   :  { %1377 = vmatpush3.bf16.msra.mxu1 %v1486_v23 }
 0x5a3   :  { %1378 = vmatprep.subr.bf16.mxu1 %v1692_v35 }
 0x5a6   :  { %1379 = vmatpush3.bf16.msra.mxu1 %v1489_v47 }
 0x5a7   :  { %1380 = vmatprep.subr.bf16.mxu1 %v1692_v35 }
 0x5aa   :  { %1381 = vmatpush3.bf16.msra.mxu1 %v1492_v21 }
 0x5ab   :  { %1382 = vmatprep.subr.bf16.mxu1 %v1692_v35 }
 0x5ae   :  { %1383 = vmatpush3.bf16.msra.mxu1 %v1495_v25 }
 0x5b1   :  { %1385 = vmatmul.mubr.bf16.vlgmr.msra.gmra.mxu1 %v988_v4 }
 0x651   :  { %v891_v39 = vpop.f32.mrf.mxu1 }
 0x652   :  { %v898_v42 = vadd.f32 %v891_v39, %v1960_v57  ;;  %v1484_v57 = vld [vmem:[#allocation11 + $0x60] sm:$0xff]  }
 0x653   :  { %v893_v43 = vpop.f32.mrf.mxu1 }
 0x654   :  { %1522 = vtanh.f32 %v898_v42  ;;  %v899_v45 = vadd.f32 %v893_v43, %v1942_v19  ;;  %v1481_v19 = vld [vmem:[#allocation11 + $0x68] sm:$0xff]  }
 0x655   :  { %v895_v46 = vpop.f32.mrf.mxu1 }
 0x656   :  { %1524 = vtanh.f32 %v899_v45 }
 0x657   :  { %v896_v49 = vpop.f32.mrf.mxu1 }
 0x661   :  { %v1523_v50 = vpop.eup %1522 }
 0x662   :  { %v2146_v52 = vadd.f32 %v1523_v50, %v853_v20  ;;  %v904_v60 = vpack.c.bf16 %v1523_v50, %v1523_v50  ;;  %v1332_v20 = vld [vmem:[%s2172_s7] ss:$0 sm:$0xff] }
 0x663   :  { %v1525_v53 = vpop.eup %1524 }
 0x664   :  { %v905_v56 = vpack.c.bf16 %v1525_v53, %v1525_v53  ;;  %v2148_v59 = vadd.f32 %v1525_v53, %v854_v26 }
 0x666   :  { %938 = vmatprep.mubr.bf16.mxu0 %v905_v56 }
 0x667   :  { %939 = vmatmul.mubr.bf16.vlgmr.msra.gmra.mxu0 %v904_v60 }
 0x668   :  { %1347 = vmatpush3.bf16.msra.mxu0 %v1476_v58 }
 0x669   :  { %1348 = vmatprep.subr.bf16.mxu0 %v1478_v27 }
 0x66c   :  { %1349 = vmatpush3.bf16.msra.mxu0 %v1479_v34 }
 0x66d   :  { %1350 = vmatprep.subr.bf16.mxu0 %v1481_v19 }
 0x670   :  { %1351 = vmatpush3.bf16.msra.mxu0 %v1482_v40 }
 0x671   :  { %1352 = vmatprep.subr.bf16.mxu0 %v1484_v57  ;;  %v1087_v8 = vpop.f32.mrf.mxu1 }
 0x673   :  { %v1386_v10 = vpop.f32.mrf.mxu1 }
 0x674   :  { %1353 = vmatpush3.bf16.msra.mxu0 %v1485_v1 }
 0x675   :  { %1354 = vmatprep.subr.bf16.mxu0 %v1487_v54 }
 0x678   :  { %1355 = vmatpush3.bf16.msra.mxu0 %v1488_v41 }
 0x679   :  { %1356 = vmatprep.subr.bf16.mxu0 %v1490_v7 }
 0x67c   :  { %1357 = vmatpush3.bf16.msra.mxu0 %v1491_v13 }
 0x67d   :  { %1358 = vmatprep.subr.bf16.mxu0 %v1493_v17 }
 0x680   :  { %1359 = vmatpush3.bf16.msra.mxu0 %v1494_v15 }
 0x681   :  { %1360 = vmatprep.subr.bf16.mxu0 %v1496_v62 }
 0x684   :  { %1361 = vmatpush3.bf16.msra.mxu0 %v1497_v2 }
 0x727   :  { %v940_v31 = vpop.f32.mrf.mxu0 }
 0x728   :  { %v947_v44 = vadd.f32 %v940_v31, %v1962_v0  ;;  %v1090_v0 = vpop.f32.mrf.mxu1 }
 0x729   :  { %v942_v33 = vpop.f32.mrf.mxu0 }
 0x72a   :  { %1526 = vtanh.f32 %v947_v44  ;;  %v948_v36 = vadd.f32 %v942_v33, %v1938_v11  ;;  %v1387_v12 = vpop.f32.mrf.mxu1 }
 0x72b   :  { %v944_v51 = vpop.f32.mrf.mxu0 }
 0x72c   :  { %1528 = vtanh.f32 %v948_v36 }
 0x72d   :  { %v945_v55 = vpop.f32.mrf.mxu0 }
 0x737   :  { %v1527_v3 = vpop.eup %1526 }
 0x738   :  { %v951_v5 = vadd.f32 %v1527_v3, %v2146_v52 }
 0x739   :  { %v1529_v9 = vpop.eup %1528 }
 0x73a   :  { %v952_v61 = vadd.f32 %v1529_v9, %v2148_v59  ;;  %v953_v6 = vpack.c.bf16 %v951_v5, %v951_v5 }
 0x73c   :  { %v954_v63 = vpack.c.bf16 %v952_v61, %v952_v61 }
 0x73e   :  { %1221 = vmatprep.mubr.bf16.mxu0 %v954_v63 }
 0x73f   :  { %1222 = vmatmul.mubr.bf16.vlgmr.msra.gmra.mxu0 %v953_v6 }
 0x7ff   :  { %v1362_v14 = vpop.f32.mrf.mxu0 }
 0x801   :  { %v1363_v16 = vpop.f32.mrf.mxu0 }
 0x802   :  { %v1364_v11 = vadd.f32 %v1363_v16, %v1362_v14 }
 0x803   :  { %v1365_v18 = vpop.f32.mrf.mxu0 }
 0x804   :  { %v1224_v22 = vadd.f32 %v1364_v11, %v1087_v8 }
 0x805   :  { %v1366_v24 = vpop.f32.mrf.mxu0 }
 0x806   :  { %v1236_v26 = vadd.f32 %v1332_v20, %v1224_v22 }
 0x808   :  { %1237 = vst [vmem:[#allocation14] sm:$0xff] %v1236_v26 }
 0x809   :  { %1662 = shalt.err (!%p1659_p6)
}
 0x80a   :  { %1247 = dma.vmem_to_hbm [thread:$0]  %s1245_s15, 128, %s2173_s8, [#allocation5]  }
 0x80b   :  { %1679 = dma.done.wait [#allocation5], 128  }
 0x80c   :  { %1680 = vsyncadd [#allocation5], 4294967168 }
 0x80d   :  { %1251 = vsyncpa [#allocation4], 1 }
 0x80e   :  { %1252 = vsyncpa [#allocation7], 1 }
 0x80f   :  { %1253 = vsyncpa [#allocation10], 1 }
 0x810   :  { %1254 = vsyncpa [#allocation13], 1 }
 0x811   :  { %1255 = vsyncpa [#allocation5], 1 }

</bundles_post_ra>
